<compile_context>
chip_gen: v7x
topology: tpu7x:2x2x1
jax: 0.10.0
libtpu: 0.0.40
codegen_flags: <defaults>
</compile_context>

<pallas_src>
import functools

import jax
import jax.numpy as jnp
from jax import lax
from jax.experimental import pallas as pl
from jax.experimental.pallas import tpu as pltpu

CHUNK = 8  # timesteps per grid step (sublane-aligned output slab: (8, 128))


def _encoder_lstm_kernel(tok_ref,          # (CHUNK, 1) i32  token ids for this chunk
                         emb_ref,          # (V, H)     bf16 full embedding table (resident)
                         wih_ref,          # (H, 4H)    bf16 W_ih^T, gate order i,f,g,o
                         whh_ref,          # (H, 4H)    bf16 W_hh^T, gate order i,f,g,o
                         b_ref,            # (1, 4H)    f32  b_ih + b_hh
                         h0_ref,           # (1, H)     f32  initial hidden
                         c0_ref,           # (1, H)     f32  initial cell
                         out_ref,          # (CHUNK, H) f32  per-step hidden outputs
                         hc_ref,           # (2, H)     f32  packed final [h_n ; c_n]
                         h_sc, c_sc,       # (1, H)     f32  VMEM carry across grid steps
                         *, seq_len, chunk):
    c_idx = pl.program_id(0)
    H = h0_ref.shape[-1]
    V = emb_ref.shape[0]

    # Seed the recurrent state once, on the first chunk.
    @pl.when(c_idx == 0)
    def _():
        h_sc[...] = h0_ref[...]
        c_sc[...] = c0_ref[...]

    # ---- Non-recurrent work for the whole chunk (batched, off the critical path) ----
    # Embedding gather as a one-hot matmul: no per-token DMAs, no dynamic indexing.
    tok = tok_ref[...]                                                        # (CHUNK, 1) i32
    onehot = (tok == lax.broadcasted_iota(jnp.int32, (chunk, V), 1)).astype(emb_ref.dtype)
    x = jnp.dot(onehot, emb_ref[...],
                preferred_element_type=jnp.float32).astype(emb_ref.dtype)     # (CHUNK, H) bf16
    # Input projection + bias hoisted out of the recurrence: one (CHUNK,H)@(H,4H) MXU dot.
    pre = jnp.dot(x, wih_ref[...], preferred_element_type=jnp.float32) + b_ref[...]  # (CHUNK,4H) f32

    # ---- Sequential LSTM recurrence over the chunk (unrolled, static indices) ----
    h = h_sc[...]
    c = c_sc[...]
    whh = whh_ref[...]

    rows = []
    for t in range(chunk):
        # Recurrent part only: (1, H) @ (H, 4H), K=128 (single v5e MXU pass).
        gates = pre[t:t + 1, :] + jnp.dot(h.astype(whh.dtype), whh,
                                          preferred_element_type=jnp.float32)
        # Gate order i, f, g, o (PyTorch); H=128 keeps every slice lane-aligned.
        i_g = jax.nn.sigmoid(gates[:, 0 * H:1 * H])
        f_g = jax.nn.sigmoid(gates[:, 1 * H:2 * H])
        g_g = jnp.tanh(gates[:, 2 * H:3 * H])
        o_g = jax.nn.sigmoid(gates[:, 3 * H:4 * H])
        c_new = f_g * c + i_g * g_g
        h_new = o_g * jnp.tanh(c_new)

        if seq_len % chunk == 0:
            h, c = h_new, c_new                      # no padded tail: no masking needed
        else:
            valid = (c_idx * chunk + t) < seq_len    # freeze state on padded tail steps
            h = jnp.where(valid, h_new, h)
            c = jnp.where(valid, c_new, c)
        rows.append(h)

    h_sc[...] = h
    c_sc[...] = c

    # One dense, (8,128)-aligned output slab per grid step (single unmasked store/writeback).
    out_ref[...] = jnp.concatenate(rows, axis=0)
    # Packed final state, refreshed every step (constant block index -> written back once).
    hc_ref[...] = jnp.concatenate([h, c], axis=0)


@jax.jit
def encoder_rnn_forward(tokens, emb_table, w_ih_t, w_hh_t, bias, h0, c0):
    """Run the EncoderRNN forward for every token in `tokens` sequentially.

    Equivalent to calling the PyTorch `EncoderRNN.forward` once per token, feeding the
    returned (h_n, c_n) back in as `hidden` (T=1 reproduces the module's forward exactly).

    Args:
      tokens:    (T,) int32 token ids.
      emb_table: (vocab, H) bf16 embedding table.
      w_ih_t:    (H, 4H) bf16 = W_ih^T   (gate order i, f, g, o).
      w_hh_t:    (H, 4H) bf16 = W_hh^T.
      bias:      (1, 4H) f32  = b_ih + b_hh.
      h0, c0:    (num_layers=1, 1, H) f32 initial states (initHidden()).

    Returns:
      outputs: (T, 1, 1, H) f32 -- per-step `output` in PyTorch (seq=1, batch=1, H) layout.
      (h_n, c_n): each (1, 1, H) f32 -- final states.
    """
    T = tokens.shape[0]
    V, H = emb_table.shape
    n_chunks = -(-T // CHUNK)
    T_pad = n_chunks * CHUNK

    # Pad the token stream to a whole number of chunks (padded steps are masked in-kernel).
    tok2d = jnp.pad(tokens.astype(jnp.int32), (0, T_pad - T)).reshape(T_pad, 1)

    kernel = functools.partial(_encoder_lstm_kernel, seq_len=T, chunk=CHUNK)

    grid_spec = pltpu.PrefetchScalarGridSpec(
        num_scalar_prefetch=0,
        grid=(n_chunks,),
        in_specs=[
            pl.BlockSpec((CHUNK, 1), lambda c: (c, 0)),        # token ids for this chunk
            # Grid-invariant operands: constant index_map => DMA'd into VMEM once per call.
            pl.BlockSpec((V, H), lambda c: (0, 0)),            # full embedding table
            pl.BlockSpec((H, 4 * H), lambda c: (0, 0)),        # W_ih^T
            pl.BlockSpec((H, 4 * H), lambda c: (0, 0)),        # W_hh^T
            pl.BlockSpec((1, 4 * H), lambda c: (0, 0)),        # bias
            pl.BlockSpec((1, H), lambda c: (0, 0)),            # h0
            pl.BlockSpec((1, H), lambda c: (0, 0)),            # c0
        ],
        out_specs=[
            pl.BlockSpec((CHUNK, H), lambda c: (c, 0)),        # dense per-step outputs
            pl.BlockSpec((2, H), lambda c: (0, 0)),            # packed final [h_n; c_n]
        ],
        scratch_shapes=[
            pltpu.VMEM((1, H), jnp.float32),                   # h carry
            pltpu.VMEM((1, H), jnp.float32),                   # c carry
        ],
    )

    outputs, hc = pl.pallas_call(
        kernel,
        out_shape=(
            jax.ShapeDtypeStruct((T_pad, H), jnp.float32),
            jax.ShapeDtypeStruct((2, H), jnp.float32),
        ),
        grid_spec=grid_spec,
        compiler_params=pltpu.CompilerParams(
            # Recurrence over time -> sequential grid axis.
            dimension_semantics=("arbitrary",)),
    )(tok2d, emb_table, w_ih_t, w_hh_t, bias, h0.reshape(1, H), c0.reshape(1, H))

    # PyTorch conventions: per-step output (seq=1, batch=1, H); states (num_layers=1, 1, H).
    outputs = outputs[:T].reshape(T, 1, 1, H)
    return outputs, (hc[0:1].reshape(1, 1, H), hc[1:2].reshape(1, 1, H))


def _reference_forward(tokens, emb_table, w_ih_t, w_hh_t, bias, h0, c0):
    """Pure-JAX reference: torch.nn.LSTM single steps unrolled (gate order i,f,g,o),
    applying the same bf16 rounding to weights / matmul inputs as the kernel."""
    H = emb_table.shape[1]
    emb = emb_table.astype(jnp.float32)
    wih = w_ih_t.astype(jnp.float32)
    whh = w_hh_t.astype(jnp.float32)
    h = h0.reshape(1, H).astype(jnp.float32)
    c = c0.reshape(1, H).astype(jnp.float32)
    outs = []
    for t in range(tokens.shape[0]):
        x = emb[tokens[t]][None, :]
        h_bf = h.astype(jnp.bfloat16).astype(jnp.float32)
        gates = x @ wih + h_bf @ whh + bias
        i_g = jax.nn.sigmoid(gates[:, 0 * H:1 * H])
        f_g = jax.nn.sigmoid(gates[:, 1 * H:2 * H])
        g_g = jnp.tanh(gates[:, 2 * H:3 * H])
        o_g = jax.nn.sigmoid(gates[:, 3 * H:4 * H])
        c = f_g * c + i_g * g_g
        h = o_g * jnp.tanh(c)
        outs.append(h)
    outputs = jnp.stack(outs, axis=0).reshape(len(outs), 1, 1, H)
    return outputs, (h.reshape(1, 1, H), c.reshape(1, 1, H))


if __name__ == "__main__":
    hidden_size = 128      # H (lane-aligned so gate slices are whole 128-lane groups)
    input_size = 16        # vocab size (nn.Embedding num_embeddings)
    num_layers = 1
    seq_len = 8

    key = jax.random.PRNGKey(0)
    k_emb, k_wih, k_whh, k_bih, k_bhh, k_tok = jax.random.split(key, 6)

    # Parameters with PyTorch shapes (weight_ih_l0 / weight_hh_l0 are (4H, H)).
    emb_table_f32 = jax.random.normal(k_emb, (input_size, hidden_size), jnp.float32) * 0.1
    w_ih = jax.random.normal(k_wih, (4 * hidden_size, hidden_size), jnp.float32) * 0.1
    w_hh = jax.random.normal(k_whh, (4 * hidden_size, hidden_size), jnp.float32) * 0.1
    b_ih = jax.random.normal(k_bih, (4 * hidden_size,), jnp.float32) * 0.1
    b_hh = jax.random.normal(k_bhh, (4 * hidden_size,), jnp.float32) * 0.1

    # Kernel layout: bf16 transposed weights, f32 combined bias, bf16 embedding table.
    w_ih_t = w_ih.T.astype(jnp.bfloat16)                       # (H, 4H)
    w_hh_t = w_hh.T.astype(jnp.bfloat16)                       # (H, 4H)
    bias = (b_ih + b_hh)[None, :].astype(jnp.float32)          # (1, 4H)
    emb_table = emb_table_f32.astype(jnp.bfloat16)             # (vocab, H)

    # initHidden(): zeros of shape (num_layers, 1, hidden_size).
    h0 = jnp.zeros((num_layers, 1, hidden_size), jnp.float32)
    c0 = jnp.zeros((num_layers, 1, hidden_size), jnp.float32)

    tokens = jax.random.randint(k_tok, (seq_len,), 0, input_size, dtype=jnp.int32)

    # --- T = 1: exactly the original single-token PyTorch forward (exercises tail masking). ---
    out1, (h1, c1) = encoder_rnn_forward(tokens[:1], emb_table, w_ih_t, w_hh_t, bias, h0, c0)
    jax.block_until_ready((out1, h1, c1))
    ref_out1, (ref_h1, ref_c1) = _reference_forward(tokens[:1], emb_table, w_ih_t, w_hh_t,
                                                    bias, h0, c0)
    assert out1.shape == (1, 1, 1, hidden_size)
    assert h1.shape == (num_layers, 1, hidden_size) and c1.shape == (num_layers, 1, hidden_size)
    assert jnp.allclose(out1, ref_out1, atol=2e-3, rtol=2e-3)
    assert jnp.allclose(h1, ref_h1, atol=2e-3, rtol=2e-3)
    assert jnp.allclose(c1, ref_c1, atol=2e-3, rtol=2e-3)

    # --- Full sequence fused into one pallas_call (== calling forward T times). ---
    outputs, (h_n, c_n) = encoder_rnn_forward(tokens, emb_table, w_ih_t, w_hh_t, bias, h0, c0)
    jax.block_until_ready((outputs, h_n, c_n))
    ref_outs, (ref_h, ref_c) = _reference_forward(tokens, emb_table, w_ih_t, w_hh_t, bias, h0, c0)

    assert outputs.shape == (seq_len, 1, 1, hidden_size)
    assert h_n.shape == (num_layers, 1, hidden_size)
    assert c_n.shape == (num_layers, 1, hidden_size)
    assert jnp.allclose(outputs, ref_outs, atol=2e-3, rtol=2e-3)
    assert jnp.allclose(h_n, ref_h, atol=2e-3, rtol=2e-3)
    assert jnp.allclose(c_n, ref_c, atol=2e-3, rtol=2e-3)

    print("KERNEL_OK")
</pallas_src>

<mosaic_0001>
module attributes {stable_mosaic.version = 11 : i64} {
  func.func @_encoder_lstm_kernel(%arg0: i32, %arg1: memref<8x1xi32, #tpu.memory_space<vmem>>, %arg2: memref<16x128xbf16, #tpu.memory_space<vmem>>, %arg3: memref<128x512xbf16, #tpu.memory_space<vmem>>, %arg4: memref<128x512xbf16, #tpu.memory_space<vmem>>, %arg5: memref<1x512xf32, #tpu.memory_space<vmem>>, %arg6: memref<1x128xf32, #tpu.memory_space<vmem>>, %arg7: memref<1x128xf32, #tpu.memory_space<vmem>>, %arg8: memref<8x128xf32, #tpu.memory_space<vmem>>, %arg9: memref<2x128xf32, #tpu.memory_space<vmem>>, %arg10: memref<1x128xf32, #tpu.memory_space<vmem>>, %arg11: memref<1x128xf32, #tpu.memory_space<vmem>>) attributes {dimension_semantics = [#tpu.dimension_semantics<arbitrary>], iteration_bounds = array<i64: 1>, scalar_prefetch = 0 : i64, scratch_operands = 2 : i64, tpu.core_type = #tpu.core_type<tc>, window_params = [{transform_indices = @transform_0, window_bounds = array<i64: 8, 1>}, {pipeline_mode = #tpu.pipeline_mode<synchronous>, transform_indices = @transform_1, window_bounds = array<i64: 16, 128>}, {pipeline_mode = #tpu.pipeline_mode<synchronous>, transform_indices = @transform_2, window_bounds = array<i64: 128, 512>}, {pipeline_mode = #tpu.pipeline_mode<synchronous>, transform_indices = @transform_3, window_bounds = array<i64: 128, 512>}, {pipeline_mode = #tpu.pipeline_mode<synchronous>, transform_indices = @transform_4, window_bounds = array<i64: 1, 512>}, {pipeline_mode = #tpu.pipeline_mode<synchronous>, transform_indices = @transform_5, window_bounds = array<i64: 1, 128>}, {pipeline_mode = #tpu.pipeline_mode<synchronous>, transform_indices = @transform_6, window_bounds = array<i64: 1, 128>}, {transform_indices = @transform_7, window_bounds = array<i64: 8, 128>}, {pipeline_mode = #tpu.pipeline_mode<synchronous>, transform_indices = @transform_8, window_bounds = array<i64: 2, 128>}]} {
    %c0_i32 = arith.constant 0 : i32
    %0 = arith.cmpi eq, %arg0, %c0_i32 : i32
    %1 = arith.extui %0 : i1 to i32
    %c0_i32_0 = arith.constant 0 : i32
    %2 = arith.cmpi ne, %1, %c0_i32_0 : i32
    scf.if %2 {
      %c0_71 = arith.constant 0 : index
      %c0_72 = arith.constant 0 : index
      %299 = vector.load %arg6[%c0_71, %c0_72] : memref<1x128xf32, #tpu.memory_space<vmem>>, vector<1x128xf32>
      %c0_73 = arith.constant 0 : index
      %c0_74 = arith.constant 0 : index
      %300 = vector.load %arg10[%c0_73, %c0_74] : memref<1x128xf32, #tpu.memory_space<vmem>>, vector<1x128xf32>
      tpu.vector_store %arg10[%c0_73, %c0_74], %299 {strides = array<i32>} : memref<1x128xf32, #tpu.memory_space<vmem>>, vector<1x128xf32>,
      %c0_75 = arith.constant 0 : index
      %c0_76 = arith.constant 0 : index
      %301 = vector.load %arg7[%c0_75, %c0_76] : memref<1x128xf32, #tpu.memory_space<vmem>>, vector<1x128xf32>
      %c0_77 = arith.constant 0 : index
      %c0_78 = arith.constant 0 : index
      %302 = vector.load %arg11[%c0_77, %c0_78] : memref<1x128xf32, #tpu.memory_space<vmem>>, vector<1x128xf32>
      tpu.vector_store %arg11[%c0_77, %c0_78], %301 {strides = array<i32>} : memref<1x128xf32, #tpu.memory_space<vmem>>, vector<1x128xf32>,
    } else {
    }
    %c0 = arith.constant 0 : index
    %c0_1 = arith.constant 0 : index
    %3 = vector.load %arg1[%c0, %c0_1] : memref<8x1xi32, #tpu.memory_space<vmem>>, vector<8x1xi32>
    %4 = tpu.iota {dimensions = array<i32: 1>} : vector<8x16xi32>
    %5 = vector.broadcast %3 : vector<8x1xi32> to vector<8x16xi32>
    %6 = arith.cmpi eq, %5, %4 : vector<8x16xi32>
    %7 = arith.extui %6 : vector<8x16xi1> to vector<8x16xi32>
    %8 = arith.sitofp %7 : vector<8x16xi32> to vector<8x16xf32>
    %9 = arith.truncf %8 : vector<8x16xf32> to vector<8x16xbf16>
    %c0_2 = arith.constant 0 : index
    %c0_3 = arith.constant 0 : index
    %10 = vector.load %arg2[%c0_2, %c0_3] : memref<16x128xbf16, #tpu.memory_space<vmem>>, vector<16x128xbf16>
    %cst = arith.constant dense<0.000000e+00> : vector<8x128xf32>
    %11 = tpu.matmul %9, %10, %cst {dimension_numbers = #tpu.dot_dimension_numbers<[1], [0], [0], [1], [0, 0, 1, 1], [], []>} : vector<8x16xbf16>, vector<16x128xbf16>, vector<8x128xf32> -> vector<8x128xf32>
    %12 = arith.truncf %11 : vector<8x128xf32> to vector<8x128xbf16>
    %c0_4 = arith.constant 0 : index
    %c0_5 = arith.constant 0 : index
    %13 = vector.load %arg3[%c0_4, %c0_5] : memref<128x512xbf16, #tpu.memory_space<vmem>>, vector<128x512xbf16>
    %cst_6 = arith.constant dense<0.000000e+00> : vector<8x512xf32>
    %14 = tpu.matmul %12, %13, %cst_6 {dimension_numbers = #tpu.dot_dimension_numbers<[1], [0], [0], [1], [0, 0, 1, 1], [], []>} : vector<8x128xbf16>, vector<128x512xbf16>, vector<8x512xf32> -> vector<8x512xf32>
    %c0_7 = arith.constant 0 : index
    %c0_8 = arith.constant 0 : index
    %15 = vector.load %arg5[%c0_7, %c0_8] : memref<1x512xf32, #tpu.memory_space<vmem>>, vector<1x512xf32>
    %16 = vector.broadcast %15 : vector<1x512xf32> to vector<8x512xf32>
    %17 = arith.addf %14, %16 : vector<8x512xf32>
    %c0_9 = arith.constant 0 : index
    %c0_10 = arith.constant 0 : index
    %18 = vector.load %arg10[%c0_9, %c0_10] : memref<1x128xf32, #tpu.memory_space<vmem>>, vector<1x128xf32>
    %c0_11 = arith.constant 0 : index
    %c0_12 = arith.constant 0 : index
    %19 = vector.load %arg11[%c0_11, %c0_12] : memref<1x128xf32, #tpu.memory_space<vmem>>, vector<1x128xf32>
    %c0_13 = arith.constant 0 : index
    %c0_14 = arith.constant 0 : index
    %20 = vector.load %arg4[%c0_13, %c0_14] : memref<128x512xbf16, #tpu.memory_space<vmem>>, vector<128x512xbf16>
    %21 = vector.extract_strided_slice %17 {offsets = [0, 0], sizes = [1, 512], strides = [1, 1]} : vector<8x512xf32> to vector<1x512xf32>
    %22 = arith.truncf %18 : vector<1x128xf32> to vector<1x128xbf16>
    %cst_15 = arith.constant dense<0.000000e+00> : vector<1x512xf32>
    %23 = tpu.matmul %22, %20, %cst_15 {dimension_numbers = #tpu.dot_dimension_numbers<[1], [0], [0], [1], [0, 0, 1, 1], [], []>} : vector<1x128xbf16>, vector<128x512xbf16>, vector<1x512xf32> -> vector<1x512xf32>
    %24 = arith.addf %21, %23 : vector<1x512xf32>
    %25 = vector.extract_strided_slice %24 {offsets = [0, 0], sizes = [1, 128], strides = [1, 1]} : vector<1x512xf32> to vector<1x128xf32>
    %26 = arith.negf %25 : vector<1x128xf32>
    %27 = math.exp %26 : vector<1x128xf32>
    %cst_16 = arith.constant 1.000000e+00 : f32
    %28 = vector.broadcast %cst_16 : f32 to vector<1x128xf32>
    %29 = arith.addf %28, %27 : vector<1x128xf32>
    %30 = arith.divf %28, %29 : vector<1x128xf32>
    %31 = vector.extract_strided_slice %24 {offsets = [0, 128], sizes = [1, 128], strides = [1, 1]} : vector<1x512xf32> to vector<1x128xf32>
    %32 = arith.negf %31 : vector<1x128xf32>
    %33 = math.exp %32 : vector<1x128xf32>
    %cst_17 = arith.constant 1.000000e+00 : f32
    %34 = vector.broadcast %cst_17 : f32 to vector<1x128xf32>
    %35 = arith.addf %34, %33 : vector<1x128xf32>
    %36 = arith.divf %34, %35 : vector<1x128xf32>
    %37 = vector.extract_strided_slice %24 {offsets = [0, 256], sizes = [1, 128], strides = [1, 1]} : vector<1x512xf32> to vector<1x128xf32>
    %38 = math.tanh %37 : vector<1x128xf32>
    %39 = vector.extract_strided_slice %24 {offsets = [0, 384], sizes = [1, 128], strides = [1, 1]} : vector<1x512xf32> to vector<1x128xf32>
    %40 = arith.negf %39 : vector<1x128xf32>
    %41 = math.exp %40 : vector<1x128xf32>
    %cst_18 = arith.constant 1.000000e+00 : f32
    %42 = vector.broadcast %cst_18 : f32 to vector<1x128xf32>
    %43 = arith.addf %42, %41 : vector<1x128xf32>
    %44 = arith.divf %42, %43 : vector<1x128xf32>
    %45 = arith.mulf %36, %19 : vector<1x128xf32>
    %46 = arith.mulf %30, %38 : vector<1x128xf32>
    %47 = arith.addf %45, %46 : vector<1x128xf32>
    %48 = math.tanh %47 : vector<1x128xf32>
    %49 = arith.mulf %44, %48 : vector<1x128xf32>
    %c8_i32 = arith.constant 8 : i32
    %50 = arith.muli %arg0, %c8_i32 : i32
    %c0_i32_19 = arith.constant 0 : i32
    %51 = arith.addi %50, %c0_i32_19 : i32
    %c1_i32 = arith.constant 1 : i32
    %52 = arith.cmpi slt, %51, %c1_i32 : i32
    %53 = arith.select %52, %49, %18 : vector<1x128xf32>
    %54 = arith.select %52, %47, %19 : vector<1x128xf32>
    %55 = vector.extract_strided_slice %17 {offsets = [1, 0], sizes = [1, 512], strides = [1, 1]} : vector<8x512xf32> to vector<1x512xf32>
    %56 = arith.truncf %53 : vector<1x128xf32> to vector<1x128xbf16>
    %cst_20 = arith.constant dense<0.000000e+00> : vector<1x512xf32>
    %57 = tpu.matmul %56, %20, %cst_20 {dimension_numbers = #tpu.dot_dimension_numbers<[1], [0], [0], [1], [0, 0, 1, 1], [], []>} : vector<1x128xbf16>, vector<128x512xbf16>, vector<1x512xf32> -> vector<1x512xf32>
    %58 = arith.addf %55, %57 : vector<1x512xf32>
    %59 = vector.extract_strided_slice %58 {offsets = [0, 0], sizes = [1, 128], strides = [1, 1]} : vector<1x512xf32> to vector<1x128xf32>
    %60 = arith.negf %59 : vector<1x128xf32>
    %61 = math.exp %60 : vector<1x128xf32>
    %cst_21 = arith.constant 1.000000e+00 : f32
    %62 = vector.broadcast %cst_21 : f32 to vector<1x128xf32>
    %63 = arith.addf %62, %61 : vector<1x128xf32>
    %64 = arith.divf %62, %63 : vector<1x128xf32>
    %65 = vector.extract_strided_slice %58 {offsets = [0, 128], sizes = [1, 128], strides = [1, 1]} : vector<1x512xf32> to vector<1x128xf32>
    %66 = arith.negf %65 : vector<1x128xf32>
    %67 = math.exp %66 : vector<1x128xf32>
    %cst_22 = arith.constant 1.000000e+00 : f32
    %68 = vector.broadcast %cst_22 : f32 to vector<1x128xf32>
    %69 = arith.addf %68, %67 : vector<1x128xf32>
    %70 = arith.divf %68, %69 : vector<1x128xf32>
    %71 = vector.extract_strided_slice %58 {offsets = [0, 256], sizes = [1, 128], strides = [1, 1]} : vector<1x512xf32> to vector<1x128xf32>
    %72 = math.tanh %71 : vector<1x128xf32>
    %73 = vector.extract_strided_slice %58 {offsets = [0, 384], sizes = [1, 128], strides = [1, 1]} : vector<1x512xf32> to vector<1x128xf32>
    %74 = arith.negf %73 : vector<1x128xf32>
    %75 = math.exp %74 : vector<1x128xf32>
    %cst_23 = arith.constant 1.000000e+00 : f32
    %76 = vector.broadcast %cst_23 : f32 to vector<1x128xf32>
    %77 = arith.addf %76, %75 : vector<1x128xf32>
    %78 = arith.divf %76, %77 : vector<1x128xf32>
    %79 = arith.mulf %70, %54 : vector<1x128xf32>
    %80 = arith.mulf %64, %72 : vector<1x128xf32>
    %81 = arith.addf %79, %80 : vector<1x128xf32>
    %82 = math.tanh %81 : vector<1x128xf32>
    %83 = arith.mulf %78, %82 : vector<1x128xf32>
    %c8_i32_24 = arith.constant 8 : i32
    %84 = arith.muli %arg0, %c8_i32_24 : i32
    %c1_i32_25 = arith.constant 1 : i32
    %85 = arith.addi %84, %c1_i32_25 : i32
    %c1_i32_26 = arith.constant 1 : i32
    %86 = arith.cmpi slt, %85, %c1_i32_26 : i32
    %87 = arith.select %86, %83, %53 : vector<1x128xf32>
    %88 = arith.select %86, %81, %54 : vector<1x128xf32>
    %89 = vector.extract_strided_slice %17 {offsets = [2, 0], sizes = [1, 512], strides = [1, 1]} : vector<8x512xf32> to vector<1x512xf32>
    %90 = arith.truncf %87 : vector<1x128xf32> to vector<1x128xbf16>
    %cst_27 = arith.constant dense<0.000000e+00> : vector<1x512xf32>
    %91 = tpu.matmul %90, %20, %cst_27 {dimension_numbers = #tpu.dot_dimension_numbers<[1], [0], [0], [1], [0, 0, 1, 1], [], []>} : vector<1x128xbf16>, vector<128x512xbf16>, vector<1x512xf32> -> vector<1x512xf32>
    %92 = arith.addf %89, %91 : vector<1x512xf32>
    %93 = vector.extract_strided_slice %92 {offsets = [0, 0], sizes = [1, 128], strides = [1, 1]} : vector<1x512xf32> to vector<1x128xf32>
    %94 = arith.negf %93 : vector<1x128xf32>
    %95 = math.exp %94 : vector<1x128xf32>
    %cst_28 = arith.constant 1.000000e+00 : f32
    %96 = vector.broadcast %cst_28 : f32 to vector<1x128xf32>
    %97 = arith.addf %96, %95 : vector<1x128xf32>
    %98 = arith.divf %96, %97 : vector<1x128xf32>
    %99 = vector.extract_strided_slice %92 {offsets = [0, 128], sizes = [1, 128], strides = [1, 1]} : vector<1x512xf32> to vector<1x128xf32>
    %100 = arith.negf %99 : vector<1x128xf32>
    %101 = math.exp %100 : vector<1x128xf32>
    %cst_29 = arith.constant 1.000000e+00 : f32
    %102 = vector.broadcast %cst_29 : f32 to vector<1x128xf32>
    %103 = arith.addf %102, %101 : vector<1x128xf32>
    %104 = arith.divf %102, %103 : vector<1x128xf32>
    %105 = vector.extract_strided_slice %92 {offsets = [0, 256], sizes = [1, 128], strides = [1, 1]} : vector<1x512xf32> to vector<1x128xf32>
    %106 = math.tanh %105 : vector<1x128xf32>
    %107 = vector.extract_strided_slice %92 {offsets = [0, 384], sizes = [1, 128], strides = [1, 1]} : vector<1x512xf32> to vector<1x128xf32>
    %108 = arith.negf %107 : vector<1x128xf32>
    %109 = math.exp %108 : vector<1x128xf32>
    %cst_30 = arith.constant 1.000000e+00 : f32
    %110 = vector.broadcast %cst_30 : f32 to vector<1x128xf32>
    %111 = arith.addf %110, %109 : vector<1x128xf32>
    %112 = arith.divf %110, %111 : vector<1x128xf32>
    %113 = arith.mulf %104, %88 : vector<1x128xf32>
    %114 = arith.mulf %98, %106 : vector<1x128xf32>
    %115 = arith.addf %113, %114 : vector<1x128xf32>
    %116 = math.tanh %115 : vector<1x128xf32>
    %117 = arith.mulf %112, %116 : vector<1x128xf32>
    %c8_i32_31 = arith.constant 8 : i32
    %118 = arith.muli %arg0, %c8_i32_31 : i32
    %c2_i32 = arith.constant 2 : i32
    %119 = arith.addi %118, %c2_i32 : i32
    %c1_i32_32 = arith.constant 1 : i32
    %120 = arith.cmpi slt, %119, %c1_i32_32 : i32
    %121 = arith.select %120, %117, %87 : vector<1x128xf32>
    %122 = arith.select %120, %115, %88 : vector<1x128xf32>
    %123 = vector.extract_strided_slice %17 {offsets = [3, 0], sizes = [1, 512], strides = [1, 1]} : vector<8x512xf32> to vector<1x512xf32>
    %124 = arith.truncf %121 : vector<1x128xf32> to vector<1x128xbf16>
    %cst_33 = arith.constant dense<0.000000e+00> : vector<1x512xf32>
    %125 = tpu.matmul %124, %20, %cst_33 {dimension_numbers = #tpu.dot_dimension_numbers<[1], [0], [0], [1], [0, 0, 1, 1], [], []>} : vector<1x128xbf16>, vector<128x512xbf16>, vector<1x512xf32> -> vector<1x512xf32>
    %126 = arith.addf %123, %125 : vector<1x512xf32>
    %127 = vector.extract_strided_slice %126 {offsets = [0, 0], sizes = [1, 128], strides = [1, 1]} : vector<1x512xf32> to vector<1x128xf32>
    %128 = arith.negf %127 : vector<1x128xf32>
    %129 = math.exp %128 : vector<1x128xf32>
    %cst_34 = arith.constant 1.000000e+00 : f32
    %130 = vector.broadcast %cst_34 : f32 to vector<1x128xf32>
    %131 = arith.addf %130, %129 : vector<1x128xf32>
    %132 = arith.divf %130, %131 : vector<1x128xf32>
    %133 = vector.extract_strided_slice %126 {offsets = [0, 128], sizes = [1, 128], strides = [1, 1]} : vector<1x512xf32> to vector<1x128xf32>
    %134 = arith.negf %133 : vector<1x128xf32>
    %135 = math.exp %134 : vector<1x128xf32>
    %cst_35 = arith.constant 1.000000e+00 : f32
    %136 = vector.broadcast %cst_35 : f32 to vector<1x128xf32>
    %137 = arith.addf %136, %135 : vector<1x128xf32>
    %138 = arith.divf %136, %137 : vector<1x128xf32>
    %139 = vector.extract_strided_slice %126 {offsets = [0, 256], sizes = [1, 128], strides = [1, 1]} : vector<1x512xf32> to vector<1x128xf32>
    %140 = math.tanh %139 : vector<1x128xf32>
    %141 = vector.extract_strided_slice %126 {offsets = [0, 384], sizes = [1, 128], strides = [1, 1]} : vector<1x512xf32> to vector<1x128xf32>
    %142 = arith.negf %141 : vector<1x128xf32>
    %143 = math.exp %142 : vector<1x128xf32>
    %cst_36 = arith.constant 1.000000e+00 : f32
    %144 = vector.broadcast %cst_36 : f32 to vector<1x128xf32>
    %145 = arith.addf %144, %143 : vector<1x128xf32>
    %146 = arith.divf %144, %145 : vector<1x128xf32>
    %147 = arith.mulf %138, %122 : vector<1x128xf32>
    %148 = arith.mulf %132, %140 : vector<1x128xf32>
    %149 = arith.addf %147, %148 : vector<1x128xf32>
    %150 = math.tanh %149 : vector<1x128xf32>
    %151 = arith.mulf %146, %150 : vector<1x128xf32>
    %c8_i32_37 = arith.constant 8 : i32
    %152 = arith.muli %arg0, %c8_i32_37 : i32
    %c3_i32 = arith.constant 3 : i32
    %153 = arith.addi %152, %c3_i32 : i32
    %c1_i32_38 = arith.constant 1 : i32
    %154 = arith.cmpi slt, %153, %c1_i32_38 : i32
    %155 = arith.select %154, %151, %121 : vector<1x128xf32>
    %156 = arith.select %154, %149, %122 : vector<1x128xf32>
    %157 = vector.extract_strided_slice %17 {offsets = [4, 0], sizes = [1, 512], strides = [1, 1]} : vector<8x512xf32> to vector<1x512xf32>
    %158 = arith.truncf %155 : vector<1x128xf32> to vector<1x128xbf16>
    %cst_39 = arith.constant dense<0.000000e+00> : vector<1x512xf32>
    %159 = tpu.matmul %158, %20, %cst_39 {dimension_numbers = #tpu.dot_dimension_numbers<[1], [0], [0], [1], [0, 0, 1, 1], [], []>} : vector<1x128xbf16>, vector<128x512xbf16>, vector<1x512xf32> -> vector<1x512xf32>
    %160 = arith.addf %157, %159 : vector<1x512xf32>
    %161 = vector.extract_strided_slice %160 {offsets = [0, 0], sizes = [1, 128], strides = [1, 1]} : vector<1x512xf32> to vector<1x128xf32>
    %162 = arith.negf %161 : vector<1x128xf32>
    %163 = math.exp %162 : vector<1x128xf32>
    %cst_40 = arith.constant 1.000000e+00 : f32
    %164 = vector.broadcast %cst_40 : f32 to vector<1x128xf32>
    %165 = arith.addf %164, %163 : vector<1x128xf32>
    %166 = arith.divf %164, %165 : vector<1x128xf32>
    %167 = vector.extract_strided_slice %160 {offsets = [0, 128], sizes = [1, 128], strides = [1, 1]} : vector<1x512xf32> to vector<1x128xf32>
    %168 = arith.negf %167 : vector<1x128xf32>
    %169 = math.exp %168 : vector<1x128xf32>
    %cst_41 = arith.constant 1.000000e+00 : f32
    %170 = vector.broadcast %cst_41 : f32 to vector<1x128xf32>
    %171 = arith.addf %170, %169 : vector<1x128xf32>
    %172 = arith.divf %170, %171 : vector<1x128xf32>
    %173 = vector.extract_strided_slice %160 {offsets = [0, 256], sizes = [1, 128], strides = [1, 1]} : vector<1x512xf32> to vector<1x128xf32>
    %174 = math.tanh %173 : vector<1x128xf32>
    %175 = vector.extract_strided_slice %160 {offsets = [0, 384], sizes = [1, 128], strides = [1, 1]} : vector<1x512xf32> to vector<1x128xf32>
    %176 = arith.negf %175 : vector<1x128xf32>
    %177 = math.exp %176 : vector<1x128xf32>
    %cst_42 = arith.constant 1.000000e+00 : f32
    %178 = vector.broadcast %cst_42 : f32 to vector<1x128xf32>
    %179 = arith.addf %178, %177 : vector<1x128xf32>
    %180 = arith.divf %178, %179 : vector<1x128xf32>
    %181 = arith.mulf %172, %156 : vector<1x128xf32>
    %182 = arith.mulf %166, %174 : vector<1x128xf32>
    %183 = arith.addf %181, %182 : vector<1x128xf32>
    %184 = math.tanh %183 : vector<1x128xf32>
    %185 = arith.mulf %180, %184 : vector<1x128xf32>
    %c8_i32_43 = arith.constant 8 : i32
    %186 = arith.muli %arg0, %c8_i32_43 : i32
    %c4_i32 = arith.constant 4 : i32
    %187 = arith.addi %186, %c4_i32 : i32
    %c1_i32_44 = arith.constant 1 : i32
    %188 = arith.cmpi slt, %187, %c1_i32_44 : i32
    %189 = arith.select %188, %185, %155 : vector<1x128xf32>
    %190 = arith.select %188, %183, %156 : vector<1x128xf32>
    %191 = vector.extract_strided_slice %17 {offsets = [5, 0], sizes = [1, 512], strides = [1, 1]} : vector<8x512xf32> to vector<1x512xf32>
    %192 = arith.truncf %189 : vector<1x128xf32> to vector<1x128xbf16>
    %cst_45 = arith.constant dense<0.000000e+00> : vector<1x512xf32>
    %193 = tpu.matmul %192, %20, %cst_45 {dimension_numbers = #tpu.dot_dimension_numbers<[1], [0], [0], [1], [0, 0, 1, 1], [], []>} : vector<1x128xbf16>, vector<128x512xbf16>, vector<1x512xf32> -> vector<1x512xf32>
    %194 = arith.addf %191, %193 : vector<1x512xf32>
    %195 = vector.extract_strided_slice %194 {offsets = [0, 0], sizes = [1, 128], strides = [1, 1]} : vector<1x512xf32> to vector<1x128xf32>
    %196 = arith.negf %195 : vector<1x128xf32>
    %197 = math.exp %196 : vector<1x128xf32>
    %cst_46 = arith.constant 1.000000e+00 : f32
    %198 = vector.broadcast %cst_46 : f32 to vector<1x128xf32>
    %199 = arith.addf %198, %197 : vector<1x128xf32>
    %200 = arith.divf %198, %199 : vector<1x128xf32>
    %201 = vector.extract_strided_slice %194 {offsets = [0, 128], sizes = [1, 128], strides = [1, 1]} : vector<1x512xf32> to vector<1x128xf32>
    %202 = arith.negf %201 : vector<1x128xf32>
    %203 = math.exp %202 : vector<1x128xf32>
    %cst_47 = arith.constant 1.000000e+00 : f32
    %204 = vector.broadcast %cst_47 : f32 to vector<1x128xf32>
    %205 = arith.addf %204, %203 : vector<1x128xf32>
    %206 = arith.divf %204, %205 : vector<1x128xf32>
    %207 = vector.extract_strided_slice %194 {offsets = [0, 256], sizes = [1, 128], strides = [1, 1]} : vector<1x512xf32> to vector<1x128xf32>
    %208 = math.tanh %207 : vector<1x128xf32>
    %209 = vector.extract_strided_slice %194 {offsets = [0, 384], sizes = [1, 128], strides = [1, 1]} : vector<1x512xf32> to vector<1x128xf32>
    %210 = arith.negf %209 : vector<1x128xf32>
    %211 = math.exp %210 : vector<1x128xf32>
    %cst_48 = arith.constant 1.000000e+00 : f32
    %212 = vector.broadcast %cst_48 : f32 to vector<1x128xf32>
    %213 = arith.addf %212, %211 : vector<1x128xf32>
    %214 = arith.divf %212, %213 : vector<1x128xf32>
    %215 = arith.mulf %206, %190 : vector<1x128xf32>
    %216 = arith.mulf %200, %208 : vector<1x128xf32>
    %217 = arith.addf %215, %216 : vector<1x128xf32>
    %218 = math.tanh %217 : vector<1x128xf32>
    %219 = arith.mulf %214, %218 : vector<1x128xf32>
    %c8_i32_49 = arith.constant 8 : i32
    %220 = arith.muli %arg0, %c8_i32_49 : i32
    %c5_i32 = arith.constant 5 : i32
    %221 = arith.addi %220, %c5_i32 : i32
    %c1_i32_50 = arith.constant 1 : i32
    %222 = arith.cmpi slt, %221, %c1_i32_50 : i32
    %223 = arith.select %222, %219, %189 : vector<1x128xf32>
    %224 = arith.select %222, %217, %190 : vector<1x128xf32>
    %225 = vector.extract_strided_slice %17 {offsets = [6, 0], sizes = [1, 512], strides = [1, 1]} : vector<8x512xf32> to vector<1x512xf32>
    %226 = arith.truncf %223 : vector<1x128xf32> to vector<1x128xbf16>
    %cst_51 = arith.constant dense<0.000000e+00> : vector<1x512xf32>
    %227 = tpu.matmul %226, %20, %cst_51 {dimension_numbers = #tpu.dot_dimension_numbers<[1], [0], [0], [1], [0, 0, 1, 1], [], []>} : vector<1x128xbf16>, vector<128x512xbf16>, vector<1x512xf32> -> vector<1x512xf32>
    %228 = arith.addf %225, %227 : vector<1x512xf32>
    %229 = vector.extract_strided_slice %228 {offsets = [0, 0], sizes = [1, 128], strides = [1, 1]} : vector<1x512xf32> to vector<1x128xf32>
    %230 = arith.negf %229 : vector<1x128xf32>
    %231 = math.exp %230 : vector<1x128xf32>
    %cst_52 = arith.constant 1.000000e+00 : f32
    %232 = vector.broadcast %cst_52 : f32 to vector<1x128xf32>
    %233 = arith.addf %232, %231 : vector<1x128xf32>
    %234 = arith.divf %232, %233 : vector<1x128xf32>
    %235 = vector.extract_strided_slice %228 {offsets = [0, 128], sizes = [1, 128], strides = [1, 1]} : vector<1x512xf32> to vector<1x128xf32>
    %236 = arith.negf %235 : vector<1x128xf32>
    %237 = math.exp %236 : vector<1x128xf32>
    %cst_53 = arith.constant 1.000000e+00 : f32
    %238 = vector.broadcast %cst_53 : f32 to vector<1x128xf32>
    %239 = arith.addf %238, %237 : vector<1x128xf32>
    %240 = arith.divf %238, %239 : vector<1x128xf32>
    %241 = vector.extract_strided_slice %228 {offsets = [0, 256], sizes = [1, 128], strides = [1, 1]} : vector<1x512xf32> to vector<1x128xf32>
    %242 = math.tanh %241 : vector<1x128xf32>
    %243 = vector.extract_strided_slice %228 {offsets = [0, 384], sizes = [1, 128], strides = [1, 1]} : vector<1x512xf32> to vector<1x128xf32>
    %244 = arith.negf %243 : vector<1x128xf32>
    %245 = math.exp %244 : vector<1x128xf32>
    %cst_54 = arith.constant 1.000000e+00 : f32
    %246 = vector.broadcast %cst_54 : f32 to vector<1x128xf32>
    %247 = arith.addf %246, %245 : vector<1x128xf32>
    %248 = arith.divf %246, %247 : vector<1x128xf32>
    %249 = arith.mulf %240, %224 : vector<1x128xf32>
    %250 = arith.mulf %234, %242 : vector<1x128xf32>
    %251 = arith.addf %249, %250 : vector<1x128xf32>
    %252 = math.tanh %251 : vector<1x128xf32>
    %253 = arith.mulf %248, %252 : vector<1x128xf32>
    %c8_i32_55 = arith.constant 8 : i32
    %254 = arith.muli %arg0, %c8_i32_55 : i32
    %c6_i32 = arith.constant 6 : i32
    %255 = arith.addi %254, %c6_i32 : i32
    %c1_i32_56 = arith.constant 1 : i32
    %256 = arith.cmpi slt, %255, %c1_i32_56 : i32
    %257 = arith.select %256, %253, %223 : vector<1x128xf32>
    %258 = arith.select %256, %251, %224 : vector<1x128xf32>
    %259 = vector.extract_strided_slice %17 {offsets = [7, 0], sizes = [1, 512], strides = [1, 1]} : vector<8x512xf32> to vector<1x512xf32>
    %260 = arith.truncf %257 : vector<1x128xf32> to vector<1x128xbf16>
    %cst_57 = arith.constant dense<0.000000e+00> : vector<1x512xf32>
    %261 = tpu.matmul %260, %20, %cst_57 {dimension_numbers = #tpu.dot_dimension_numbers<[1], [0], [0], [1], [0, 0, 1, 1], [], []>} : vector<1x128xbf16>, vector<128x512xbf16>, vector<1x512xf32> -> vector<1x512xf32>
    %262 = arith.addf %259, %261 : vector<1x512xf32>
    %263 = vector.extract_strided_slice %262 {offsets = [0, 0], sizes = [1, 128], strides = [1, 1]} : vector<1x512xf32> to vector<1x128xf32>
    %264 = arith.negf %263 : vector<1x128xf32>
    %265 = math.exp %264 : vector<1x128xf32>
    %cst_58 = arith.constant 1.000000e+00 : f32
    %266 = vector.broadcast %cst_58 : f32 to vector<1x128xf32>
    %267 = arith.addf %266, %265 : vector<1x128xf32>
    %268 = arith.divf %266, %267 : vector<1x128xf32>
    %269 = vector.extract_strided_slice %262 {offsets = [0, 128], sizes = [1, 128], strides = [1, 1]} : vector<1x512xf32> to vector<1x128xf32>
    %270 = arith.negf %269 : vector<1x128xf32>
    %271 = math.exp %270 : vector<1x128xf32>
    %cst_59 = arith.constant 1.000000e+00 : f32
    %272 = vector.broadcast %cst_59 : f32 to vector<1x128xf32>
    %273 = arith.addf %272, %271 : vector<1x128xf32>
    %274 = arith.divf %272, %273 : vector<1x128xf32>
    %275 = vector.extract_strided_slice %262 {offsets = [0, 256], sizes = [1, 128], strides = [1, 1]} : vector<1x512xf32> to vector<1x128xf32>
    %276 = math.tanh %275 : vector<1x128xf32>
    %277 = vector.extract_strided_slice %262 {offsets = [0, 384], sizes = [1, 128], strides = [1, 1]} : vector<1x512xf32> to vector<1x128xf32>
    %278 = arith.negf %277 : vector<1x128xf32>
    %279 = math.exp %278 : vector<1x128xf32>
    %cst_60 = arith.constant 1.000000e+00 : f32
    %280 = vector.broadcast %cst_60 : f32 to vector<1x128xf32>
    %281 = arith.addf %280, %279 : vector<1x128xf32>
    %282 = arith.divf %280, %281 : vector<1x128xf32>
    %283 = arith.mulf %274, %258 : vector<1x128xf32>
    %284 = arith.mulf %268, %276 : vector<1x128xf32>
    %285 = arith.addf %283, %284 : vector<1x128xf32>
    %286 = math.tanh %285 : vector<1x128xf32>
    %287 = arith.mulf %282, %286 : vector<1x128xf32>
    %c8_i32_61 = arith.constant 8 : i32
    %288 = arith.muli %arg0, %c8_i32_61 : i32
    %c7_i32 = arith.constant 7 : i32
    %289 = arith.addi %288, %c7_i32 : i32
    %c1_i32_62 = arith.constant 1 : i32
    %290 = arith.cmpi slt, %289, %c1_i32_62 : i32
    %291 = arith.select %290, %287, %257 : vector<1x128xf32>
    %292 = arith.select %290, %285, %258 : vector<1x128xf32>
    %c0_63 = arith.constant 0 : index
    %c0_64 = arith.constant 0 : index
    %293 = vector.load %arg10[%c0_63, %c0_64] : memref<1x128xf32, #tpu.memory_space<vmem>>, vector<1x128xf32>
    tpu.vector_store %arg10[%c0_63, %c0_64], %291 {strides = array<i32>} : memref<1x128xf32, #tpu.memory_space<vmem>>, vector<1x128xf32>,
    %c0_65 = arith.constant 0 : index
    %c0_66 = arith.constant 0 : index
    %294 = vector.load %arg11[%c0_65, %c0_66] : memref<1x128xf32, #tpu.memory_space<vmem>>, vector<1x128xf32>
    tpu.vector_store %arg11[%c0_65, %c0_66], %292 {strides = array<i32>} : memref<1x128xf32, #tpu.memory_space<vmem>>, vector<1x128xf32>,
    %295 = tpu.concatenate %53, %87, %121, %155, %189, %223, %257, %291 in 0 : vector<1x128xf32>, vector<1x128xf32>, vector<1x128xf32>, vector<1x128xf32>, vector<1x128xf32>, vector<1x128xf32>, vector<1x128xf32>, vector<1x128xf32> -> vector<8x128xf32>
    %c0_67 = arith.constant 0 : index
    %c0_68 = arith.constant 0 : index
    %296 = vector.load %arg8[%c0_67, %c0_68] : memref<8x128xf32, #tpu.memory_space<vmem>>, vector<8x128xf32>
    tpu.vector_store %arg8[%c0_67, %c0_68], %295 {strides = array<i32>} : memref<8x128xf32, #tpu.memory_space<vmem>>, vector<8x128xf32>,
    %297 = tpu.concatenate %291, %292 in 0 : vector<1x128xf32>, vector<1x128xf32> -> vector<2x128xf32>
    %c0_69 = arith.constant 0 : index
    %c0_70 = arith.constant 0 : index
    %298 = vector.load %arg9[%c0_69, %c0_70] : memref<2x128xf32, #tpu.memory_space<vmem>>, vector<2x128xf32>
    tpu.vector_store %arg9[%c0_69, %c0_70], %297 {strides = array<i32>} : memref<2x128xf32, #tpu.memory_space<vmem>>, vector<2x128xf32>,
    return
  }
  func.func @transform_0(%arg0: i32) -> (i32, i32) {
    %c0_i32 = arith.constant 0 : i32
    %c0_i32_0 = arith.constant 0 : i32
    return %arg0, %c0_i32 : i32, i32
  }
  func.func @transform_1(%arg0: i32) -> (i32, i32) {
    %c0_i32 = arith.constant 0 : i32
    %c0_i32_0 = arith.constant 0 : i32
    %c0_i32_1 = arith.constant 0 : i32
    return %c0_i32, %c0_i32_0 : i32, i32
  }
  func.func @transform_2(%arg0: i32) -> (i32, i32) {
    %c0_i32 = arith.constant 0 : i32
    %c0_i32_0 = arith.constant 0 : i32
    %c0_i32_1 = arith.constant 0 : i32
    return %c0_i32, %c0_i32_0 : i32, i32
  }
  func.func @transform_3(%arg0: i32) -> (i32, i32) {
    %c0_i32 = arith.constant 0 : i32
    %c0_i32_0 = arith.constant 0 : i32
    %c0_i32_1 = arith.constant 0 : i32
    return %c0_i32, %c0_i32_0 : i32, i32
  }
  func.func @transform_4(%arg0: i32) -> (i32, i32) {
    %c0_i32 = arith.constant 0 : i32
    %c0_i32_0 = arith.constant 0 : i32
    %c0_i32_1 = arith.constant 0 : i32
    return %c0_i32, %c0_i32_0 : i32, i32
  }
  func.func @transform_5(%arg0: i32) -> (i32, i32) {
    %c0_i32 = arith.constant 0 : i32
    %c0_i32_0 = arith.constant 0 : i32
    %c0_i32_1 = arith.constant 0 : i32
    return %c0_i32, %c0_i32_0 : i32, i32
  }
  func.func @transform_6(%arg0: i32) -> (i32, i32) {
    %c0_i32 = arith.constant 0 : i32
    %c0_i32_0 = arith.constant 0 : i32
    %c0_i32_1 = arith.constant 0 : i32
    return %c0_i32, %c0_i32_0 : i32, i32
  }
  func.func @transform_7(%arg0: i32) -> (i32, i32) {
    %c0_i32 = arith.constant 0 : i32
    %c0_i32_0 = arith.constant 0 : i32
    return %arg0, %c0_i32 : i32, i32
  }
  func.func @transform_8(%arg0: i32) -> (i32, i32) {
    %c0_i32 = arith.constant 0 : i32
    %c0_i32_0 = arith.constant 0 : i32
    %c0_i32_1 = arith.constant 0 : i32
    return %c0_i32, %c0_i32_0 : i32, i32
  }
}

</mosaic_0001>

<bundles_post_ra>
// kernel: encoder_rnn_forward.1
= control target key start
LH: loop header
LB: loop body
LE: loop exit
PB: predicated region body
PF: predicated region fallthrough
CT: control target
= control target key end

     0   :  { %14 = vsyncpa [#allocation5], 0  ;;  %s2501_s0 = inlined_call_operand.vmem [shape: s32[8,1], index: 0, kind: input, shape index: {}]   ;;  %s2502_s1 = inlined_call_operand.vmem [shape: bf16[16,128], index: 1, kind: input, shape index: {}]   ;;  %s2503_s2 = inlined_call_operand.hbm [shape: bf16[128,512], index: 2, kind: input, shape index: {}]   ;;  %s2504_s3 = inlined_call_operand.hbm [shape: bf16[128,512], index: 3, kind: input, shape index: {}]   ;;  %s2505_s4 = inlined_call_operand.vmem [shape: f32[1,512], index: 4, kind: input, shape index: {}]   ;;  %s2506_s5 = inlined_call_operand.vmem [shape: f32[1,128], index: 5, kind: input, shape index: {}]   ;;  %s2507_s6 = inlined_call_operand.vmem [shape: f32[1,128], index: 6, kind: input, shape index: {}]   ;;  %s2508_s7 = inlined_call_operand.vmem [shape: f32[8,128], index: 7, kind: output, shape index: {0}]   ;;  %s2509_s8 = inlined_call_operand.vmem [shape: f32[2,128], index: 8, kind: output, shape index: {1}]  }
   0x1   :  { %15 = vsyncpa [#allocation7], 0  ;;  %s2031_s27 = smov [#allocation4]   ;;  %s1983_s9 = scalar_lea.hbm %s2503_s2, 4096 }
   0x2   :  { %s25_s28 = sshll.u32 %s2031_s27, 4  ;;  %p1984_p0 = scmp.ne.s32.totalorder %s2503_s2, %s1983_s9  ;;  %s26_s28 = int_to_ptr.vmem [resolvable:$true] %s25_s28 }
   0x3   :  { %p1987_p1 = scmp.lt.u32.totalorder %s1983_s9, %s2503_s2 }
   0x5   :  { %p1989_p2 = pnand %p1987_p1, %p1984_p0 }
   0x7   :  { %1992 = shalt.err (!%p1989_p2)
}
   0x8   :  { %s1993_s14 = scalar_lea.vmem %s26_s28, 4096  ;;  %p1998_p4 = scmp.lt.s32.totalorder %s26_s28, %s26_s28 }
   0x9   :  { %p1994_p3 = scmp.ne.s32.totalorder %s26_s28, %s1993_s14  ;;  %p1999_p5 = scmp.lt.s32.totalorder %s1993_s14, %s1993_s14 }
   0xb   :  { %p2000_p6 = por %p1999_p5, %p1998_p4 }
   0xd   :  { %p2001_p7 = pnand %p2000_p6, %p1994_p3 }
   0xf   :  { %2004 = shalt.err (!%p2001_p7)
}
  0x10   :  { %s2032_s15 = smov 256   ;;  %s2033_s16 = smov 16  }
  0x11   :  { %31 = dma.hbm_to_vmem [thread:$0]  %s2503_s2, 4096, %s26_s28, [#allocation5], %s2032_s15, %s2032_s15, %s2033_s16  }
  0x12   :  { %s2034_s19 = smov [#allocation6]   ;;  %s2005_s23 = scalar_lea.hbm %s2504_s3, 4096 }
  0x13   :  { %s37_s20 = sshll.u32 %s2034_s19, 4  ;;  %p2006_p8 = scmp.ne.s32.totalorder %s2504_s3, %s2005_s23  ;;  %s38_s20 = int_to_ptr.vmem [resolvable:$true] %s37_s20 }
  0x14   :  { %p2009_p9 = scmp.lt.u32.totalorder %s2005_s23, %s2504_s3 }
  0x16   :  { %p2011_p10 = pnand %p2009_p9, %p2006_p8 }
  0x18   :  { %2014 = shalt.err (!%p2011_p10)
}
  0x19   :  { %s2015_s29 = scalar_lea.vmem %s38_s20, 4096  ;;  %p2020_p12 = scmp.lt.s32.totalorder %s38_s20, %s38_s20 }
  0x1a   :  { %p2016_p11 = scmp.ne.s32.totalorder %s38_s20, %s2015_s29  ;;  %p2021_p13 = scmp.lt.s32.totalorder %s2015_s29, %s2015_s29 }
  0x1c   :  { %p2022_p0 = por %p2021_p13, %p2020_p12 }
  0x1e   :  { %p2023_p1 = pnand %p2022_p0, %p2016_p11 }
  0x20   :  { %2026 = shalt.err (!%p2023_p1)
}
  0x21   :  { %43 = dma.hbm_to_vmem [thread:$0]  %s2504_s3, 4096, %s38_s20, [#allocation7], %s2032_s15, %s2032_s15, %s2033_s16  }
  0x22   :  { %2027 = dma.done.wait [#allocation5], 4096  }
  0x23   :  { %2028 = vsyncadd [#allocation5], 4294963200 }
  0x24   :  { %2029 = dma.done.wait [#allocation7], 4096  }
  0x25   :  { %2030 = vsyncadd [#allocation7], 4294963200  ;;  %v2035_v0 = vmov 0   ;;  %v2036_v1 = vmov 0.0   ;;  %v65_v2 = vld [vmem:[%s2501_s0] sm:$0xff]  ;;  %vm2037_vm0 = vmmov 0   ;;  %v66_v21 = vlaneseq }
  0x26   :  { %1869 = vset.pattern.permute.xlu0 %v2035_v0  ;;  %1844 = vmatprep.subr.bf16.mxu0 %v2036_v1  ;;  %v1870_v3 = vld [vmem:[%s2502_s1] sm:$0xff]   ;;  %vm83_vm2 = vcmask 130048   ;;  %v1873_v25 = vld [vmem:[#allocation4 + $0x8] ss:$16 sps:$4 sm:$0xff]   ;;  %vm1713_vm3 = vcmask 1040384   ;;  %vm1715_vm4 = vcmask 1041408  }
  0x27   :  { %374 = vmatprep.mubr.bf16.mxu1 %v2035_v0  ;;  %69 = vperm.xlu0 %1869, %v65_v2   ;;  %v1871_v4 = vld [vmem:[#allocation4 + $0x4] ss:$16 sps:$4 sm:$0xff]   ;;  %v1875_v5 = vld [vmem:[#allocation4 + $0xc] ss:$16 sps:$4 sm:$0xff]   ;;  %v1876_v6 = vld [vmem:[#allocation4] ss:$16 sps:$4 sm:$0xff]  }
  0x28   :  { %1845 = vmatpush3.bf16.msra.mxu0 %v1870_v3  ;;  %1846 = vmatprep.mubr.msk.bf16.mxu0 %vm2037_vm0, %v2036_v1  ;;  %v1877_v7 = vld [vmem:[#allocation4 + $0x24] ss:$16 sps:$4 sm:$0xff]   ;;  %v1882_v8 = vld [vmem:[#allocation4 + $0x20] ss:$16 sps:$4 sm:$0xff]   ;;  %v67_v22 = vand.u32 127, %v66_v21  ;;  %vm1717_vm5 = vcmask 1042432  }
  0x29   :  { %342 = vmatprep.subr.bf16.mxu1 %v1871_v4  ;;  %383 = vmatprep.subr.bf16.mxu0 %v1875_v5  ;;  %v1883_v9 = vld [vmem:[#allocation4 + $0x44] ss:$16 sps:$4 sm:$0xff]   ;;  %v1888_v10 = vld [vmem:[#allocation4 + $0x40] ss:$16 sps:$4 sm:$0xff]   ;;  %v1881_v27 = vld [vmem:[#allocation4 + $0x2c] ss:$16 sps:$4 sm:$0xff]  }
  0x2a   :  { %343 = vmatpush1.bf16.msra.mxu1 %v1876_v6  ;;  %v1889_v11 = vld [vmem:[#allocation4 + $0x64] ss:$16 sps:$4 sm:$0xff]   ;;  %v1894_v12 = vld [vmem:[#allocation4 + $0x60] ss:$16 sps:$4 sm:$0xff]   ;;  %v1879_v28 = vld [vmem:[#allocation4 + $0x28] ss:$16 sps:$4 sm:$0xff]  }
  0x2b   :  { %344 = vmatprep.subr.bf16.mxu1 %v1877_v7  ;;  %v1895_v13 = vld [vmem:[#allocation4 + $0x84] ss:$16 sps:$4 sm:$0xff]   ;;  %v1900_v14 = vld [vmem:[#allocation4 + $0x80] ss:$16 sps:$4 sm:$0xff]   ;;  %v1887_v29 = vld [vmem:[#allocation4 + $0x4c] ss:$16 sps:$4 sm:$0xff]  }
  0x2c   :  { %v1901_v15 = vld [vmem:[#allocation4 + $0xa4] ss:$16 sps:$4 sm:$0xff]   ;;  %v1906_v16 = vld [vmem:[#allocation4 + $0xa0] ss:$16 sps:$4 sm:$0xff]   ;;  %v1885_v30 = vld [vmem:[#allocation4 + $0x48] ss:$16 sps:$4 sm:$0xff]  }
  0x2d   :  { %v1907_v17 = vld [vmem:[#allocation4 + $0xc4] ss:$16 sps:$4 sm:$0xff]   ;;  %v1912_v18 = vld [vmem:[#allocation4 + $0xc0] ss:$16 sps:$4 sm:$0xff]   ;;  %v1893_v31 = vld [vmem:[#allocation4 + $0x6c] ss:$16 sps:$4 sm:$0xff]  }
  0x2e   :  { %345 = vmatpush1.bf16.msra.mxu1 %v1882_v8  ;;  %v1913_v19 = vld [vmem:[#allocation4 + $0xe4] ss:$16 sps:$4 sm:$0xff]   ;;  %v1918_v20 = vld [vmem:[#allocation4 + $0xe0] ss:$16 sps:$4 sm:$0xff]   ;;  %v1891_v32 = vld [vmem:[#allocation4 + $0x68] ss:$16 sps:$4 sm:$0xff]  }
  0x2f   :  { %346 = vmatprep.subr.bf16.mxu1 %v1883_v9  ;;  %v1899_v33 = vld [vmem:[#allocation4 + $0x8c] ss:$16 sps:$4 sm:$0xff]   ;;  %v1897_v34 = vld [vmem:[#allocation4 + $0x88] ss:$16 sps:$4 sm:$0xff]   ;;  %v2117_v41 = vld [vmem:[#allocation6 + $0x4] ss:$16 sps:$4 sm:$0xff]  }
  0x30   :  { %v1905_v35 = vld [vmem:[#allocation4 + $0xac] ss:$16 sps:$4 sm:$0xff]   ;;  %v1903_v36 = vld [vmem:[#allocation4 + $0xa8] ss:$16 sps:$4 sm:$0xff]   ;;  %v2126_v45 = vld [vmem:[#allocation6] ss:$16 sps:$4 sm:$0xff]  }
  0x31   :  { %v1911_v37 = vld [vmem:[#allocation4 + $0xcc] ss:$16 sps:$4 sm:$0xff]   ;;  %v1909_v38 = vld [vmem:[#allocation4 + $0xc8] ss:$16 sps:$4 sm:$0xff]   ;;  %v2130_v49 = vld [vmem:[#allocation6 + $0x24] ss:$16 sps:$4 sm:$0xff]  }
  0x32   :  { %347 = vmatpush1.bf16.msra.mxu1 %v1888_v10  ;;  %v1917_v39 = vld [vmem:[#allocation4 + $0xec] ss:$16 sps:$4 sm:$0xff]   ;;  %v1915_v40 = vld [vmem:[#allocation4 + $0xe8] ss:$16 sps:$4 sm:$0xff]   ;;  %v2136_v53 = vld [vmem:[#allocation6 + $0x20] ss:$16 sps:$4 sm:$0xff]  }
  0x33   :  { %348 = vmatprep.subr.bf16.mxu1 %v1889_v11  ;;  %v2119_v42 = vld [vmem:[#allocation6 + $0xc] ss:$16 sps:$4 sm:$0xff]   ;;  %v2128_v46 = vld [vmem:[#allocation6 + $0x8] ss:$16 sps:$4 sm:$0xff]   ;;  %v2142_v55 = vld [vmem:[#allocation6 + $0x44] ss:$16 sps:$4 sm:$0xff]  }
  0x34   :  { %v61_v43 = vld [vmem:[%s2506_s5] sm:$0x1]  ;;  %v2138_v54 = vld [vmem:[#allocation6 + $0x28] ss:$16 sps:$4 sm:$0xff]   ;;  %v2150_v57 = vld [vmem:[#allocation6 + $0x40] ss:$16 sps:$4 sm:$0xff]  }
  0x35   :  { %62 = vst [vmem:[#allocation2] sm:$0x1] %v61_v43  ;;  %v2132_v50 = vld [vmem:[#allocation6 + $0x2c] ss:$16 sps:$4 sm:$0xff]   ;;  %v2152_v58 = vld [vmem:[#allocation6 + $0x48] ss:$16 sps:$4 sm:$0xff]  }
  0x36   :  { %349 = vmatpush1.bf16.msra.mxu1 %v1894_v12  ;;  %v2144_v56 = vld [vmem:[#allocation6 + $0x4c] ss:$16 sps:$4 sm:$0xff]   ;;  %v2156_v59 = vld [vmem:[#allocation6 + $0x64] ss:$16 sps:$4 sm:$0xff]   ;;  %v2162_v61 = vld [vmem:[#allocation6 + $0x60] ss:$16 sps:$4 sm:$0xff]  }
  0x37   :  { %350 = vmatprep.subr.bf16.mxu1 %v1895_v13  ;;  %v2158_v60 = vld [vmem:[#allocation6 + $0x6c] ss:$16 sps:$4 sm:$0xff]   ;;  %v2164_v62 = vld [vmem:[#allocation6 + $0x68] ss:$16 sps:$4 sm:$0xff]   ;;  %v2168_v63 = vld [vmem:[#allocation6 + $0x84] ss:$16 sps:$4 sm:$0xff]  }
  0x38   :  { %v2174_v2 = vld [vmem:[#allocation6 + $0x80] ss:$16 sps:$4 sm:$0xff]   ;;  %v2176_v3 = vld [vmem:[#allocation6 + $0x88] ss:$16 sps:$4 sm:$0xff]   ;;  %v2180_v4 = vld [vmem:[#allocation6 + $0xa4] ss:$16 sps:$4 sm:$0xff]  }
  0x39   :  { %v2182_v5 = vld [vmem:[#allocation6 + $0xac] ss:$16 sps:$4 sm:$0xff]   ;;  %v2186_v6 = vld [vmem:[#allocation6 + $0xa0] ss:$16 sps:$4 sm:$0xff]   ;;  %v2188_v7 = vld [vmem:[#allocation6 + $0xa8] ss:$16 sps:$4 sm:$0xff]  }
  0x3a   :  { %351 = vmatpush1.bf16.msra.mxu1 %v1900_v14  ;;  %v2192_v8 = vld [vmem:[#allocation6 + $0xc4] ss:$16 sps:$4 sm:$0xff]   ;;  %v2194_v9 = vld [vmem:[#allocation6 + $0xcc] ss:$16 sps:$4 sm:$0xff]   ;;  %v2198_v10 = vld [vmem:[#allocation6 + $0xc0] ss:$16 sps:$4 sm:$0xff]  }
  0x3b   :  { %352 = vmatprep.subr.bf16.mxu1 %v1901_v15  ;;  %v2200_v11 = vld [vmem:[#allocation6 + $0xc8] ss:$16 sps:$4 sm:$0xff]   ;;  %v2204_v12 = vld [vmem:[#allocation6 + $0xe4] ss:$16 sps:$4 sm:$0xff]   ;;  %v2206_v13 = vld [vmem:[#allocation6 + $0xec] ss:$16 sps:$4 sm:$0xff]  }
  0x3c   :  { %v2210_v14 = vld [vmem:[#allocation6 + $0xe0] ss:$16 sps:$4 sm:$0xff]   ;;  %v2212_v15 = vld [vmem:[#allocation6 + $0xe8] ss:$16 sps:$4 sm:$0xff]   ;;  %vm1719_vm6 = vcmask 1043456   ;;  %vm1721_vm7 = vcmask 1044480  }
  0x3d   :  { %vm1723_vm8 = vcmask 1045504   ;;  %vm1725_vm9 = vcmask 1046528  }
  0x3e   :  { %353 = vmatpush1.bf16.msra.mxu1 %v1906_v16  ;;  %v424_v16 = vld [vmem:[#allocation2] sm:$0x1] }
  0x3f   :  { %354 = vmatprep.subr.bf16.mxu1 %v1907_v17  ;;  %v458_v17 = vpack.c.bf16 %v424_v16, %v424_v16 }
  0x42   :  { %355 = vmatpush1.bf16.msra.mxu1 %v1912_v18  ;;  %v63_v18 = vld [vmem:[%s2507_s6] sm:$0x1] }
  0x43   :  { %356 = vmatprep.subr.bf16.mxu1 %v1913_v19  ;;  %64 = vst [vmem:[#allocation3] sm:$0x1] %v63_v18  ;;  %v163_v19 = vshrl.u32 %v66_v21, 7 }
  0x46   :  { %357 = vmatpush1.bf16.msra.mxu1 %v1918_v20  ;;  %v164_v20 = vsub.s32 0, %v163_v19 }
  0x47   :  { %619 = vmatprep.subr.bf16.mxu1 %v2117_v41 }
  0xa6   :  { %v70_v23 = vpop.permute.xlu0 %69 }
  0xa7   :  { %vm71_vm1 = vcmp.eq.s32.totalorder %v70_v23, %v67_v22  ;;  %v172_v22 = vsub.s32 2, %v163_v19  ;;  %v160_v23 = vld [vmem:[%s2505_s4] sm:$0xf] }
  0xa8   :  { %v1746_v24 = vsel %vm71_vm1, 1.0, %v2036_v1  ;;  %v2170_v1 = vld [vmem:[#allocation6 + $0x8c] ss:$16 sps:$4 sm:$0xff]  }
  0xa9   :  { %v74_v26 = vpack.c.bf16 %v1746_v24, %v1746_v24  ;;  %v168_v24 = vsub.s32 1, %v163_v19 }
  0xab   :  { %1847 = vmatmul.mubr.msk.bf16.vlgmr.msra.gmra.mrb[0].mxu0 %vm83_vm2, %v74_v26  ;;  %v165_v26 = vrot.slane %v160_v23, %v164_v20 }
  0xac   :  { %384 = vmatpush1.bf16.msra.mxu0 %v1873_v25  ;;  %415 = vmatprep.mubr.bf16.mxu0 %v2035_v0  ;;  %v176_v25 = vsub.s32 3, %v163_v19  ;;  %v425_v19 = vld [vmem:[#allocation3] sm:$0x1] }
  0xad   :  { %385 = vmatprep.subr.bf16.mxu0 %v1881_v27  ;;  %v173_v27 = vrot.slane %v160_v23, %v172_v22 }
  0xb0   :  { %386 = vmatpush1.bf16.msra.mxu0 %v1879_v28  ;;  %v169_v28 = vrot.slane %v160_v23, %v168_v24 }
  0xb1   :  { %387 = vmatprep.subr.bf16.mxu0 %v1887_v29  ;;  %v177_v29 = vrot.slane %v160_v23, %v176_v25 }
  0xb4   :  { %388 = vmatpush1.bf16.msra.mxu0 %v1885_v30 }
  0xb5   :  { %389 = vmatprep.subr.bf16.mxu0 %v1893_v31 }
  0xb8   :  { %390 = vmatpush1.bf16.msra.mxu0 %v1891_v32 }
  0xb9   :  { %391 = vmatprep.subr.bf16.mxu0 %v1899_v33 }
  0xbc   :  { %392 = vmatpush1.bf16.msra.mxu0 %v1897_v34 }
  0xbd   :  { %393 = vmatprep.subr.bf16.mxu0 %v1905_v35 }
  0xc0   :  { %394 = vmatpush1.bf16.msra.mxu0 %v1903_v36 }
  0xc1   :  { %395 = vmatprep.subr.bf16.mxu0 %v1911_v37 }
  0xc4   :  { %396 = vmatpush1.bf16.msra.mxu0 %v1909_v38 }
  0xc5   :  { %397 = vmatprep.subr.bf16.mxu0 %v1917_v39 }
  0xc8   :  { %398 = vmatpush1.bf16.msra.mxu0 %v1915_v40 }
  0xc9   :  { %660 = vmatprep.subr.bf16.mxu0 %v2119_v42 }
 0x17e   :  { %v121_v44 = vpop.f32.mrb[0].mxu0 }
 0x17f   :  { %v127_v47 = vpack.c.bf16 %v121_v44, %v121_v44  ;;  %v1848_v48 = vpop.f32.mrb[1].mxu0 }
 0x180   :  { %v124_v51 = vpop.f32.mrb[2].mxu0 }
 0x181   :  { %v1849_v52 = vpop.f32.mrb[3].mxu0  ;;  %375 = vmatmul.mubr.bf16.vlgmr.msra.gmra.mrb[0].mxu1 %v127_v47  ;;  %416 = vmatmul.mubr.bf16.vlgmr.msra.gmra.mrb[4].mxu0 %v127_v47 }
 0x182   :  { %620 = vmatpush1.bf16.msra.mxu1 %v2126_v45  ;;  %661 = vmatpush1.bf16.msra.mxu0 %v2128_v46 }
 0x183   :  { %621 = vmatprep.subr.bf16.mxu1 %v2130_v49  ;;  %662 = vmatprep.subr.bf16.mxu0 %v2132_v50 }
 0x184   :  { %651 = vmatprep.mubr.bf16.mxu1 %v2035_v0  ;;  %692 = vmatprep.mubr.bf16.mxu0 %v2035_v0 }
 0x186   :  { %622 = vmatpush1.bf16.msra.mxu1 %v2136_v53  ;;  %663 = vmatpush1.bf16.msra.mxu0 %v2138_v54 }
 0x187   :  { %623 = vmatprep.subr.bf16.mxu1 %v2142_v55  ;;  %664 = vmatprep.subr.bf16.mxu0 %v2144_v56 }
 0x18a   :  { %624 = vmatpush1.bf16.msra.mxu1 %v2150_v57  ;;  %665 = vmatpush1.bf16.msra.mxu0 %v2152_v58 }
 0x18b   :  { %625 = vmatprep.subr.bf16.mxu1 %v2156_v59  ;;  %666 = vmatprep.subr.bf16.mxu0 %v2158_v60 }
 0x18e   :  { %626 = vmatpush1.bf16.msra.mxu1 %v2162_v61  ;;  %667 = vmatpush1.bf16.msra.mxu0 %v2164_v62 }
 0x18f   :  { %627 = vmatprep.subr.bf16.mxu1 %v2168_v63  ;;  %668 = vmatprep.subr.bf16.mxu0 %v2170_v1 }
 0x192   :  { %628 = vmatpush1.bf16.msra.mxu1 %v2174_v2  ;;  %669 = vmatpush1.bf16.msra.mxu0 %v2176_v3 }
 0x193   :  { %629 = vmatprep.subr.bf16.mxu1 %v2180_v4  ;;  %670 = vmatprep.subr.bf16.mxu0 %v2182_v5 }
 0x196   :  { %630 = vmatpush1.bf16.msra.mxu1 %v2186_v6  ;;  %671 = vmatpush1.bf16.msra.mxu0 %v2188_v7 }
 0x197   :  { %631 = vmatprep.subr.bf16.mxu1 %v2192_v8  ;;  %672 = vmatprep.subr.bf16.mxu0 %v2194_v9 }
 0x19a   :  { %632 = vmatpush1.bf16.msra.mxu1 %v2198_v10  ;;  %673 = vmatpush1.bf16.msra.mxu0 %v2200_v11 }
 0x19b   :  { %633 = vmatprep.subr.bf16.mxu1 %v2204_v12  ;;  %674 = vmatprep.subr.bf16.mxu0 %v2206_v13 }
 0x19e   :  { %634 = vmatpush1.bf16.msra.mxu1 %v2210_v14  ;;  %675 = vmatpush1.bf16.msra.mxu0 %v2212_v15 }
 0x19f   :  { %737 = vmatprep.subr.bf16.mxu1 %v2117_v41  ;;  %778 = vmatprep.subr.bf16.mxu0 %v2119_v42 }
 0x1a1   :  { %652 = vmatmul.mubr.bf16.vlgmr.msra.gmra.mrb[0].mxu1 %v458_v17  ;;  %693 = vmatmul.mubr.bf16.vlgmr.msra.gmra.mrb[4].mxu0 %v458_v17 }
 0x1a2   :  { %738 = vmatpush1.bf16.msra.mxu1 %v2126_v45  ;;  %779 = vmatpush1.bf16.msra.mxu0 %v2128_v46 }
 0x1a3   :  { %739 = vmatprep.subr.bf16.mxu1 %v2130_v49  ;;  %780 = vmatprep.subr.bf16.mxu0 %v2132_v50 }
 0x1a4   :  { %769 = vmatprep.mubr.bf16.mxu1 %v2035_v0  ;;  %810 = vmatprep.mubr.bf16.mxu0 %v2035_v0 }
 0x1a6   :  { %740 = vmatpush1.bf16.msra.mxu1 %v2136_v53  ;;  %781 = vmatpush1.bf16.msra.mxu0 %v2138_v54 }
 0x1a7   :  { %741 = vmatprep.subr.bf16.mxu1 %v2142_v55  ;;  %782 = vmatprep.subr.bf16.mxu0 %v2144_v56 }
 0x1aa   :  { %742 = vmatpush1.bf16.msra.mxu1 %v2150_v57  ;;  %783 = vmatpush1.bf16.msra.mxu0 %v2152_v58 }
 0x1ab   :  { %743 = vmatprep.subr.bf16.mxu1 %v2156_v59  ;;  %784 = vmatprep.subr.bf16.mxu0 %v2158_v60 }
 0x1ae   :  { %744 = vmatpush1.bf16.msra.mxu1 %v2162_v61  ;;  %785 = vmatpush1.bf16.msra.mxu0 %v2164_v62 }
 0x1af   :  { %745 = vmatprep.subr.bf16.mxu1 %v2168_v63  ;;  %786 = vmatprep.subr.bf16.mxu0 %v2170_v1 }
 0x1b2   :  { %746 = vmatpush1.bf16.msra.mxu1 %v2174_v2  ;;  %787 = vmatpush1.bf16.msra.mxu0 %v2176_v3 }
 0x1b3   :  { %747 = vmatprep.subr.bf16.mxu1 %v2180_v4  ;;  %788 = vmatprep.subr.bf16.mxu0 %v2182_v5 }
 0x1b6   :  { %748 = vmatpush1.bf16.msra.mxu1 %v2186_v6  ;;  %789 = vmatpush1.bf16.msra.mxu0 %v2188_v7 }
 0x1b7   :  { %749 = vmatprep.subr.bf16.mxu1 %v2192_v8  ;;  %790 = vmatprep.subr.bf16.mxu0 %v2194_v9 }
 0x1ba   :  { %750 = vmatpush1.bf16.msra.mxu1 %v2198_v10  ;;  %791 = vmatpush1.bf16.msra.mxu0 %v2200_v11 }
 0x1bb   :  { %751 = vmatprep.subr.bf16.mxu1 %v2204_v12  ;;  %792 = vmatprep.subr.bf16.mxu0 %v2206_v13 }
 0x1be   :  { %752 = vmatpush1.bf16.msra.mxu1 %v2210_v14  ;;  %793 = vmatpush1.bf16.msra.mxu0 %v2212_v15 }
 0x1bf   :  { %877 = vmatprep.subr.bf16.mxu1 %v2117_v41  ;;  %918 = vmatprep.subr.bf16.mxu0 %v2119_v42 }
 0x274   :  { %v653_v30 = vpop.f32.mrb[0].mxu1  ;;  %v694_v31 = vpop.f32.mrb[4].mxu0 }
 0x275   :  { %v1850_v32 = vadd.f32 %v653_v30, %v165_v26  ;;  %v1852_v33 = vadd.f32 %v694_v31, %v173_v27  ;;  %v655_v34 = vpop.f32.mrb[1].mxu1  ;;  %v696_v35 = vpop.f32.mrb[5].mxu0 }
 0x276   :  { %v1851_v36 = vadd.f32 %v655_v34, %v169_v28  ;;  %v1853_v21 = vadd.f32 %v696_v35, %v177_v29  ;;  %v657_v37 = vpop.f32.mrb[2].mxu1  ;;  %v698_v38 = vpop.f32.mrb[6].mxu0 }
 0x277   :  { %v1813_v39 = vmul.f32 -1.442695, %v1850_v32  ;;  %v658_v40 = vpop.f32.mrb[3].mxu1  ;;  %v699_v43 = vpop.f32.mrb[7].mxu0 }
 0x278   :  { %v1814_v44 = vmul.f32 -1.442695, %v1851_v36  ;;  %v1815_v47 = vmul.f32 -1.442695, %v1853_v21 }
 0x279   :  { %1967 = vpow2.f32 %v1813_v39 }
 0x27a   :  { %1969 = vpow2.f32 %v1814_v44 }
 0x27b   :  { %1971 = vpow2.f32 %v1815_v47 }
 0x27c   :  { %1973 = vtanh.f32 %v1852_v33 }
 0x283   :  { %v1968_v48 = vpop.eup %1967 }
 0x284   :  { %v1970_v51 = vpop.eup %1969  ;;  %v708_v52 = vadd.f32 1.0, %v1968_v48 }
 0x285   :  { %v714_v16 = vadd.f32 1.0, %v1970_v51  ;;  %v1972_v17 = vpop.eup %1971 }
 0x286   :  { %1975 = vrcp.f32 %v708_v52  ;;  %v1974_v18 = vpop.eup %1973  ;;  %v721_v24 = vadd.f32 1.0, %v1972_v17 }
 0x287   :  { %1977 = vrcp.f32 %v714_v16 }
 0x288   :  { %1979 = vrcp.f32 %v721_v24 }
 0x290   :  { %v1976_v20 = vpop.eup %1975 }
 0x291   :  { %v1978_v22 = vpop.eup %1977  ;;  %v725_v23 = vmul.f32 %v1976_v20, %v1974_v18 }
 0x292   :  { %v724_v25 = vmul.f32 %v1978_v22, %v425_v19  ;;  %v1980_v29 = vpop.eup %1979 }
 0x294   :  { %v726_v26 = vadd.f32 %v725_v23, %v724_v25 }
 0x296   :  { %1981 = vtanh.f32 %v726_v26  ;;  %v1841_v27 = vrot.slane %v726_v26, 42 }
 0x298   :  { %v1694_v28 = vrot.slane %v1841_v27, 7 }
 0x29a   :  { %1712 = vst [vmem:[#allocation3 - $0x7] sm:$0x80] %v1694_v28  ;;  %v1732_v51 = vrot.slane %v1694_v28, 6 }
 0x2a0   :  { %v1982_v30 = vpop.eup %1981 }
 0x2a1   :  { %v728_v31 = vmul.f32 %v1982_v30, %v1980_v29 }
 0x2a3   :  { %v736_v32 = vpack.c.bf16 %v728_v31, %v728_v31  ;;  %v868_v33 = vrot.slane %v728_v31, 7 }
 0x2a5   :  { %770 = vmatmul.mubr.bf16.vlgmr.msra.gmra.mrb[4].mxu1 %v736_v32  ;;  %811 = vmatmul.mubr.bf16.vlgmr.msra.gmra.mrb[8].mxu0 %v736_v32  ;;  %v1714_v34 = vsel %vm1713_vm3, %v728_v31, %v868_v33  ;;  %v2262_v35 = vrot.slane %v868_v33, 7  ;;  %v872_v18 = vpack.c.bf16 %v868_v33, %v868_v33 }
 0x2a6   :  { %878 = vmatpush1.bf16.msra.mxu1 %v2126_v45  ;;  %919 = vmatpush1.bf16.msra.mxu0 %v2128_v46 }
 0x2a7   :  { %879 = vmatprep.subr.bf16.mxu1 %v2130_v49  ;;  %920 = vmatprep.subr.bf16.mxu0 %v2132_v50  ;;  %v1716_v36 = vsel %vm1715_vm4, %v1714_v34, %v2262_v35  ;;  %v2270_v21 = vrot.slane %v2262_v35, 7  ;;  %v874_v19 = vshrl.u32 %v872_v18, 16  ;;  %v1012_v20 = vpack.c.bf16 %v2262_v35, %v2262_v35 }
 0x2a8   :  { %909 = vmatprep.mubr.bf16.mxu1 %v2035_v0  ;;  %950 = vmatprep.mubr.bf16.mxu0 %v2035_v0 }
 0x2a9   :  { %v1718_v37 = vsel %vm1717_vm5, %v1716_v36, %v2270_v21  ;;  %v2276_v38 = vrot.slane %v2270_v21, 7  ;;  %v1014_v22 = vrot.slane %v1012_v20, 1  ;;  %v1151_v23 = vpack.c.bf16 %v2270_v21, %v2270_v21 }
 0x2aa   :  { %880 = vmatpush1.bf16.msra.mxu1 %v2136_v53  ;;  %921 = vmatpush1.bf16.msra.mxu0 %v2138_v54 }
 0x2ab   :  { %881 = vmatprep.subr.bf16.mxu1 %v2142_v55  ;;  %922 = vmatprep.subr.bf16.mxu0 %v2144_v56  ;;  %v1720_v39 = vsel %vm1719_vm6, %v1718_v37, %v2276_v38  ;;  %v2284_v40 = vrot.slane %v2276_v38, 7  ;;  %v1153_v24 = vshrl.u32 %v1151_v23, 16  ;;  %v1292_v26 = vpack.c.bf16 %v2276_v38, %v2276_v38 }
 0x2ad   :  { %v1722_v43 = vsel %vm1721_vm7, %v1720_v39, %v2284_v40  ;;  %v2290_v44 = vrot.slane %v2284_v40, 7  ;;  %v1155_v25 = vrot.slane %v1153_v24, 1  ;;  %v1294_v27 = vrot.slane %v1292_v26, 2 }
 0x2ae   :  { %882 = vmatpush1.bf16.msra.mxu1 %v2150_v57  ;;  %923 = vmatpush1.bf16.msra.mxu0 %v2152_v58  ;;  %v1431_v28 = vpack.c.bf16 %v2284_v40, %v2284_v40 }
 0x2af   :  { %883 = vmatprep.subr.bf16.mxu1 %v2156_v59  ;;  %924 = vmatprep.subr.bf16.mxu0 %v2158_v60  ;;  %v1707_v47 = vrot.slane %v2290_v44, 7  ;;  %v1724_v48 = vsel %vm1723_vm8, %v1722_v43, %v2290_v44 }
 0x2b0   :  { %v1433_v29 = vshrl.u32 %v1431_v28, 16 }
 0x2b1   :  { %1711 = vst [vmem:[#allocation2 - $0x7] sm:$0x80] %v1707_v47  ;;  %v1726_v52 = vsel %vm1725_vm9, %v1724_v48, %v1707_v47  ;;  %v1729_v16 = vrot.slane %v1707_v47, 7 }
 0x2b2   :  { %884 = vmatpush1.bf16.msra.mxu1 %v2162_v61  ;;  %925 = vmatpush1.bf16.msra.mxu0 %v2164_v62  ;;  %1727 = vst [vmem:[%s2508_s7] sm:$0xff] %v1726_v52  ;;  %v1435_v30 = vrot.slane %v1433_v29, 2 }
 0x2b3   :  { %885 = vmatprep.subr.bf16.mxu1 %v2168_v63  ;;  %926 = vmatprep.subr.bf16.mxu0 %v2170_v1  ;;  %v1734_v17 = vsel %vm1713_vm3, %v1729_v16, %v1732_v51 }
 0x2b4   :  { %1735 = vst [vmem:[%s2509_s8] sm:$0x3] %v1734_v17 }
 0x2b6   :  { %886 = vmatpush1.bf16.msra.mxu1 %v2174_v2  ;;  %927 = vmatpush1.bf16.msra.mxu0 %v2176_v3 }
 0x2b7   :  { %887 = vmatprep.subr.bf16.mxu1 %v2180_v4  ;;  %928 = vmatprep.subr.bf16.mxu0 %v2182_v5 }
 0x2ba   :  { %888 = vmatpush1.bf16.msra.mxu1 %v2186_v6  ;;  %929 = vmatpush1.bf16.msra.mxu0 %v2188_v7 }
 0x2bb   :  { %889 = vmatprep.subr.bf16.mxu1 %v2192_v8  ;;  %930 = vmatprep.subr.bf16.mxu0 %v2194_v9 }
 0x2be   :  { %890 = vmatpush1.bf16.msra.mxu1 %v2198_v10  ;;  %931 = vmatpush1.bf16.msra.mxu0 %v2200_v11 }
 0x2bf   :  { %891 = vmatprep.subr.bf16.mxu1 %v2204_v12  ;;  %932 = vmatprep.subr.bf16.mxu0 %v2206_v13 }
 0x2c2   :  { %892 = vmatpush1.bf16.msra.mxu1 %v2210_v14  ;;  %933 = vmatpush1.bf16.msra.mxu0 %v2212_v15 }
 0x2c3   :  { %1016 = vmatprep.subr.bf16.mxu1 %v2117_v41  ;;  %1057 = vmatprep.subr.bf16.mxu0 %v2119_v42 }
 0x2c5   :  { %910 = vmatmul.mubr.bf16.vlgmr.msra.gmra.mrb[8].mxu1 %v874_v19  ;;  %951 = vmatmul.mubr.bf16.vlgmr.msra.gmra.mrb[12].mxu0 %v874_v19 }
 0x2c6   :  { %1017 = vmatpush1.bf16.msra.mxu1 %v2126_v45  ;;  %1058 = vmatpush1.bf16.msra.mxu0 %v2128_v46 }
 0x2c7   :  { %1018 = vmatprep.subr.bf16.mxu1 %v2130_v49  ;;  %1059 = vmatprep.subr.bf16.mxu0 %v2132_v50 }
 0x2c8   :  { %1048 = vmatprep.mubr.bf16.mxu1 %v2035_v0  ;;  %1089 = vmatprep.mubr.bf16.mxu0 %v2035_v0 }
 0x2ca   :  { %1019 = vmatpush1.bf16.msra.mxu1 %v2136_v53  ;;  %1060 = vmatpush1.bf16.msra.mxu0 %v2138_v54 }
 0x2cb   :  { %1020 = vmatprep.subr.bf16.mxu1 %v2142_v55  ;;  %1061 = vmatprep.subr.bf16.mxu0 %v2144_v56 }
 0x2ce   :  { %1021 = vmatpush1.bf16.msra.mxu1 %v2150_v57  ;;  %1062 = vmatpush1.bf16.msra.mxu0 %v2152_v58 }
 0x2cf   :  { %1022 = vmatprep.subr.bf16.mxu1 %v2156_v59  ;;  %1063 = vmatprep.subr.bf16.mxu0 %v2158_v60 }
 0x2d2   :  { %1023 = vmatpush1.bf16.msra.mxu1 %v2162_v61  ;;  %1064 = vmatpush1.bf16.msra.mxu0 %v2164_v62 }
 0x2d3   :  { %1024 = vmatprep.subr.bf16.mxu1 %v2168_v63  ;;  %1065 = vmatprep.subr.bf16.mxu0 %v2170_v1 }
 0x2d6   :  { %1025 = vmatpush1.bf16.msra.mxu1 %v2174_v2  ;;  %1066 = vmatpush1.bf16.msra.mxu0 %v2176_v3 }
 0x2d7   :  { %1026 = vmatprep.subr.bf16.mxu1 %v2180_v4  ;;  %1067 = vmatprep.subr.bf16.mxu0 %v2182_v5 }
 0x2da   :  { %1027 = vmatpush1.bf16.msra.mxu1 %v2186_v6  ;;  %1068 = vmatpush1.bf16.msra.mxu0 %v2188_v7 }
 0x2db   :  { %1028 = vmatprep.subr.bf16.mxu1 %v2192_v8  ;;  %1069 = vmatprep.subr.bf16.mxu0 %v2194_v9 }
 0x2de   :  { %1029 = vmatpush1.bf16.msra.mxu1 %v2198_v10  ;;  %1070 = vmatpush1.bf16.msra.mxu0 %v2200_v11 }
 0x2df   :  { %1030 = vmatprep.subr.bf16.mxu1 %v2204_v12  ;;  %1071 = vmatprep.subr.bf16.mxu0 %v2206_v13 }
 0x2e2   :  { %1031 = vmatpush1.bf16.msra.mxu1 %v2210_v14  ;;  %1072 = vmatpush1.bf16.msra.mxu0 %v2212_v15 }
 0x2e3   :  { %1157 = vmatprep.subr.bf16.mxu1 %v2117_v41  ;;  %1198 = vmatprep.subr.bf16.mxu0 %v2119_v42 }
 0x2e5   :  { %1049 = vmatmul.mubr.bf16.vlgmr.msra.gmra.mrb[12].mxu1 %v1014_v22  ;;  %1090 = vmatmul.mubr.bf16.vlgmr.msra.gmra.mrb[16].mxu0 %v1014_v22 }
 0x2e6   :  { %1158 = vmatpush1.bf16.msra.mxu1 %v2126_v45  ;;  %1199 = vmatpush1.bf16.msra.mxu0 %v2128_v46 }
 0x2e7   :  { %1159 = vmatprep.subr.bf16.mxu1 %v2130_v49  ;;  %1200 = vmatprep.subr.bf16.mxu0 %v2132_v50 }
 0x2e8   :  { %1189 = vmatprep.mubr.bf16.mxu1 %v2035_v0  ;;  %1230 = vmatprep.mubr.bf16.mxu0 %v2035_v0 }
 0x2ea   :  { %1160 = vmatpush1.bf16.msra.mxu1 %v2136_v53  ;;  %1201 = vmatpush1.bf16.msra.mxu0 %v2138_v54 }
 0x2eb   :  { %1161 = vmatprep.subr.bf16.mxu1 %v2142_v55  ;;  %1202 = vmatprep.subr.bf16.mxu0 %v2144_v56 }
 0x2ee   :  { %1162 = vmatpush1.bf16.msra.mxu1 %v2150_v57  ;;  %1203 = vmatpush1.bf16.msra.mxu0 %v2152_v58 }
 0x2ef   :  { %1163 = vmatprep.subr.bf16.mxu1 %v2156_v59  ;;  %1204 = vmatprep.subr.bf16.mxu0 %v2158_v60 }
 0x2f2   :  { %1164 = vmatpush1.bf16.msra.mxu1 %v2162_v61  ;;  %1205 = vmatpush1.bf16.msra.mxu0 %v2164_v62 }
 0x2f3   :  { %1165 = vmatprep.subr.bf16.mxu1 %v2168_v63  ;;  %1206 = vmatprep.subr.bf16.mxu0 %v2170_v1 }
 0x2f6   :  { %1166 = vmatpush1.bf16.msra.mxu1 %v2174_v2  ;;  %1207 = vmatpush1.bf16.msra.mxu0 %v2176_v3 }
 0x2f7   :  { %1167 = vmatprep.subr.bf16.mxu1 %v2180_v4  ;;  %1208 = vmatprep.subr.bf16.mxu0 %v2182_v5 }
 0x2fa   :  { %1168 = vmatpush1.bf16.msra.mxu1 %v2186_v6  ;;  %1209 = vmatpush1.bf16.msra.mxu0 %v2188_v7 }
 0x2fb   :  { %1169 = vmatprep.subr.bf16.mxu1 %v2192_v8  ;;  %1210 = vmatprep.subr.bf16.mxu0 %v2194_v9 }
 0x2fe   :  { %1170 = vmatpush1.bf16.msra.mxu1 %v2198_v10  ;;  %1211 = vmatpush1.bf16.msra.mxu0 %v2200_v11 }
 0x2ff   :  { %1171 = vmatprep.subr.bf16.mxu1 %v2204_v12  ;;  %1212 = vmatprep.subr.bf16.mxu0 %v2206_v13 }
 0x302   :  { %1172 = vmatpush1.bf16.msra.mxu1 %v2210_v14  ;;  %1213 = vmatpush1.bf16.msra.mxu0 %v2212_v15 }
 0x303   :  { %1296 = vmatprep.subr.bf16.mxu1 %v2117_v41  ;;  %1337 = vmatprep.subr.bf16.mxu0 %v2119_v42 }
 0x305   :  { %1190 = vmatmul.mubr.bf16.vlgmr.msra.gmra.mrb[16].mxu1 %v1155_v25  ;;  %1231 = vmatmul.mubr.bf16.vlgmr.msra.gmra.mrb[20].mxu0 %v1155_v25 }
 0x306   :  { %1297 = vmatpush1.bf16.msra.mxu1 %v2126_v45  ;;  %1338 = vmatpush1.bf16.msra.mxu0 %v2128_v46 }
 0x307   :  { %1298 = vmatprep.subr.bf16.mxu1 %v2130_v49  ;;  %1339 = vmatprep.subr.bf16.mxu0 %v2132_v50 }
 0x308   :  { %1328 = vmatprep.mubr.bf16.mxu1 %v2035_v0  ;;  %1369 = vmatprep.mubr.bf16.mxu0 %v2035_v0 }
 0x30a   :  { %1299 = vmatpush1.bf16.msra.mxu1 %v2136_v53  ;;  %1340 = vmatpush1.bf16.msra.mxu0 %v2138_v54 }
 0x30b   :  { %1300 = vmatprep.subr.bf16.mxu1 %v2142_v55  ;;  %1341 = vmatprep.subr.bf16.mxu0 %v2144_v56 }
 0x30e   :  { %1301 = vmatpush1.bf16.msra.mxu1 %v2150_v57  ;;  %1342 = vmatpush1.bf16.msra.mxu0 %v2152_v58 }
 0x30f   :  { %1302 = vmatprep.subr.bf16.mxu1 %v2156_v59  ;;  %1343 = vmatprep.subr.bf16.mxu0 %v2158_v60 }
 0x312   :  { %1303 = vmatpush1.bf16.msra.mxu1 %v2162_v61  ;;  %1344 = vmatpush1.bf16.msra.mxu0 %v2164_v62 }
 0x313   :  { %1304 = vmatprep.subr.bf16.mxu1 %v2168_v63  ;;  %1345 = vmatprep.subr.bf16.mxu0 %v2170_v1 }
 0x316   :  { %1305 = vmatpush1.bf16.msra.mxu1 %v2174_v2  ;;  %1346 = vmatpush1.bf16.msra.mxu0 %v2176_v3 }
 0x317   :  { %1306 = vmatprep.subr.bf16.mxu1 %v2180_v4  ;;  %1347 = vmatprep.subr.bf16.mxu0 %v2182_v5 }
 0x31a   :  { %1307 = vmatpush1.bf16.msra.mxu1 %v2186_v6  ;;  %1348 = vmatpush1.bf16.msra.mxu0 %v2188_v7 }
 0x31b   :  { %1308 = vmatprep.subr.bf16.mxu1 %v2192_v8  ;;  %1349 = vmatprep.subr.bf16.mxu0 %v2194_v9 }
 0x31e   :  { %1309 = vmatpush1.bf16.msra.mxu1 %v2198_v10  ;;  %1350 = vmatpush1.bf16.msra.mxu0 %v2200_v11 }
 0x31f   :  { %1310 = vmatprep.subr.bf16.mxu1 %v2204_v12  ;;  %1351 = vmatprep.subr.bf16.mxu0 %v2206_v13 }
 0x322   :  { %1311 = vmatpush1.bf16.msra.mxu1 %v2210_v14  ;;  %1352 = vmatpush1.bf16.msra.mxu0 %v2212_v15 }
 0x323   :  { %1437 = vmatprep.subr.bf16.mxu1 %v2117_v41  ;;  %1478 = vmatprep.subr.bf16.mxu0 %v2119_v42 }
 0x325   :  { %1329 = vmatmul.mubr.bf16.vlgmr.msra.gmra.mrb[20].mxu1 %v1294_v27  ;;  %1370 = vmatmul.mubr.bf16.vlgmr.msra.gmra.mrb[24].mxu0 %v1294_v27 }
 0x326   :  { %1438 = vmatpush1.bf16.msra.mxu1 %v2126_v45  ;;  %1479 = vmatpush1.bf16.msra.mxu0 %v2128_v46 }
 0x327   :  { %1439 = vmatprep.subr.bf16.mxu1 %v2130_v49  ;;  %1480 = vmatprep.subr.bf16.mxu0 %v2132_v50 }
 0x328   :  { %1469 = vmatprep.mubr.bf16.mxu1 %v2035_v0  ;;  %1510 = vmatprep.mubr.bf16.mxu0 %v2035_v0 }
 0x32a   :  { %1440 = vmatpush1.bf16.msra.mxu1 %v2136_v53  ;;  %1481 = vmatpush1.bf16.msra.mxu0 %v2138_v54 }
 0x32b   :  { %1441 = vmatprep.subr.bf16.mxu1 %v2142_v55  ;;  %1482 = vmatprep.subr.bf16.mxu0 %v2144_v56 }
 0x32e   :  { %1442 = vmatpush1.bf16.msra.mxu1 %v2150_v57  ;;  %1483 = vmatpush1.bf16.msra.mxu0 %v2152_v58 }
 0x32f   :  { %1443 = vmatprep.subr.bf16.mxu1 %v2156_v59  ;;  %1484 = vmatprep.subr.bf16.mxu0 %v2158_v60 }
 0x332   :  { %1444 = vmatpush1.bf16.msra.mxu1 %v2162_v61  ;;  %1485 = vmatpush1.bf16.msra.mxu0 %v2164_v62 }
 0x333   :  { %1445 = vmatprep.subr.bf16.mxu1 %v2168_v63  ;;  %1486 = vmatprep.subr.bf16.mxu0 %v2170_v1 }
 0x336   :  { %1446 = vmatpush1.bf16.msra.mxu1 %v2174_v2  ;;  %1487 = vmatpush1.bf16.msra.mxu0 %v2176_v3 }
 0x337   :  { %1447 = vmatprep.subr.bf16.mxu1 %v2180_v4  ;;  %1488 = vmatprep.subr.bf16.mxu0 %v2182_v5 }
 0x33a   :  { %1448 = vmatpush1.bf16.msra.mxu1 %v2186_v6  ;;  %1489 = vmatpush1.bf16.msra.mxu0 %v2188_v7 }
 0x33b   :  { %1449 = vmatprep.subr.bf16.mxu1 %v2192_v8  ;;  %1490 = vmatprep.subr.bf16.mxu0 %v2194_v9 }
 0x33e   :  { %1450 = vmatpush1.bf16.msra.mxu1 %v2198_v10  ;;  %1491 = vmatpush1.bf16.msra.mxu0 %v2200_v11 }
 0x33f   :  { %1451 = vmatprep.subr.bf16.mxu1 %v2204_v12  ;;  %1492 = vmatprep.subr.bf16.mxu0 %v2206_v13 }
 0x342   :  { %1452 = vmatpush1.bf16.msra.mxu1 %v2210_v14  ;;  %1493 = vmatpush1.bf16.msra.mxu0 %v2212_v15 }
 0x343   :  { %1576 = vmatprep.subr.bf16.mxu1 %v2117_v41  ;;  %1617 = vmatprep.subr.bf16.mxu0 %v2119_v42 }
 0x345   :  { %1470 = vmatmul.mubr.bf16.vlgmr.msra.gmra.mrb[24].mxu1 %v1435_v30  ;;  %1511 = vmatmul.mubr.bf16.vlgmr.msra.gmra.mrb[28].mxu0 %v1435_v30 }
 0x346   :  { %1577 = vmatpush1.bf16.msra.mxu1 %v2126_v45  ;;  %1618 = vmatpush1.bf16.msra.mxu0 %v2128_v46 }
 0x347   :  { %1578 = vmatprep.subr.bf16.mxu1 %v2130_v49  ;;  %1619 = vmatprep.subr.bf16.mxu0 %v2132_v50 }
 0x348   :  { %1608 = vmatprep.mubr.bf16.mxu1 %v2035_v0  ;;  %1649 = vmatprep.mubr.bf16.mxu0 %v2035_v0  ;;  %v1572_v0 = vpack.c.bf16 %v2290_v44, %v2290_v44 }
 0x34a   :  { %1579 = vmatpush1.bf16.msra.mxu1 %v2136_v53  ;;  %1620 = vmatpush1.bf16.msra.mxu0 %v2138_v54  ;;  %v1574_v41 = vrot.slane %v1572_v0, 3 }
 0x34b   :  { %1580 = vmatprep.subr.bf16.mxu1 %v2142_v55  ;;  %1621 = vmatprep.subr.bf16.mxu0 %v2144_v56 }
 0x34e   :  { %1581 = vmatpush1.bf16.msra.mxu1 %v2150_v57  ;;  %1622 = vmatpush1.bf16.msra.mxu0 %v2152_v58 }
 0x34f   :  { %1582 = vmatprep.subr.bf16.mxu1 %v2156_v59  ;;  %1623 = vmatprep.subr.bf16.mxu0 %v2158_v60 }
 0x352   :  { %1583 = vmatpush1.bf16.msra.mxu1 %v2162_v61  ;;  %1624 = vmatpush1.bf16.msra.mxu0 %v2164_v62 }
 0x353   :  { %1584 = vmatprep.subr.bf16.mxu1 %v2168_v63  ;;  %1625 = vmatprep.subr.bf16.mxu0 %v2170_v1 }
 0x356   :  { %1585 = vmatpush1.bf16.msra.mxu1 %v2174_v2  ;;  %1626 = vmatpush1.bf16.msra.mxu0 %v2176_v3 }
 0x357   :  { %1586 = vmatprep.subr.bf16.mxu1 %v2180_v4  ;;  %1627 = vmatprep.subr.bf16.mxu0 %v2182_v5 }
 0x35a   :  { %1587 = vmatpush1.bf16.msra.mxu1 %v2186_v6  ;;  %1628 = vmatpush1.bf16.msra.mxu0 %v2188_v7 }
 0x35b   :  { %1588 = vmatprep.subr.bf16.mxu1 %v2192_v8  ;;  %1629 = vmatprep.subr.bf16.mxu0 %v2194_v9 }
 0x35e   :  { %1589 = vmatpush1.bf16.msra.mxu1 %v2198_v10  ;;  %1630 = vmatpush1.bf16.msra.mxu0 %v2200_v11 }
 0x35f   :  { %1590 = vmatprep.subr.bf16.mxu1 %v2204_v12  ;;  %1631 = vmatprep.subr.bf16.mxu0 %v2206_v13 }
 0x362   :  { %1591 = vmatpush1.bf16.msra.mxu1 %v2210_v14  ;;  %1632 = vmatpush1.bf16.msra.mxu0 %v2212_v15 }
 0x365   :  { %1609 = vmatmul.mubr.bf16.vlgmr.msra.gmra.mrb[28].mxu1 %v1574_v41  ;;  %1650 = vmatmul.mubr.bf16.vlgmr.msra.gmra.mrb[32].mxu0 %v1574_v41 }
 0x378   :  { %v771_v42 = vpop.f32.mrb[4].mxu1  ;;  %v812_v45 = vpop.f32.mrb[8].mxu0 }
 0x379   :  { %v773_v46 = vpop.f32.mrb[5].mxu1  ;;  %v814_v49 = vpop.f32.mrb[9].mxu0 }
 0x37a   :  { %v775_v50 = vpop.f32.mrb[6].mxu1  ;;  %v816_v53 = vpop.f32.mrb[10].mxu0 }
 0x37b   :  { %v776_v54 = vpop.f32.mrb[7].mxu1  ;;  %v817_v55 = vpop.f32.mrb[11].mxu0 }
 0x398   :  { %v911_v56 = vpop.f32.mrb[8].mxu1  ;;  %v952_v57 = vpop.f32.mrb[12].mxu0 }
 0x399   :  { %v913_v58 = vpop.f32.mrb[9].mxu1  ;;  %v954_v59 = vpop.f32.mrb[13].mxu0 }
 0x39a   :  { %v915_v60 = vpop.f32.mrb[10].mxu1  ;;  %v956_v61 = vpop.f32.mrb[14].mxu0 }
 0x39b   :  { %v916_v62 = vpop.f32.mrb[11].mxu1  ;;  %v957_v63 = vpop.f32.mrb[15].mxu0 }
 0x3b8   :  { %v1050_v1 = vpop.f32.mrb[12].mxu1  ;;  %v1091_v2 = vpop.f32.mrb[16].mxu0 }
 0x3b9   :  { %v1052_v3 = vpop.f32.mrb[13].mxu1  ;;  %v1093_v4 = vpop.f32.mrb[17].mxu0 }
 0x3ba   :  { %v1054_v5 = vpop.f32.mrb[14].mxu1  ;;  %v1095_v6 = vpop.f32.mrb[18].mxu0 }
 0x3bb   :  { %v1055_v7 = vpop.f32.mrb[15].mxu1  ;;  %v1096_v8 = vpop.f32.mrb[19].mxu0 }
 0x3d8   :  { %v1191_v9 = vpop.f32.mrb[16].mxu1  ;;  %v1232_v10 = vpop.f32.mrb[20].mxu0 }
 0x3d9   :  { %v1193_v11 = vpop.f32.mrb[17].mxu1  ;;  %v1234_v12 = vpop.f32.mrb[21].mxu0 }
 0x3da   :  { %v1195_v13 = vpop.f32.mrb[18].mxu1  ;;  %v1236_v14 = vpop.f32.mrb[22].mxu0 }
 0x3db   :  { %v1196_v15 = vpop.f32.mrb[19].mxu1  ;;  %v1237_v31 = vpop.f32.mrb[23].mxu0 }
 0x3f8   :  { %v1330_v32 = vpop.f32.mrb[20].mxu1  ;;  %v1371_v33 = vpop.f32.mrb[24].mxu0 }
 0x3f9   :  { %v1332_v34 = vpop.f32.mrb[21].mxu1  ;;  %v1373_v35 = vpop.f32.mrb[25].mxu0 }
 0x3fa   :  { %v1334_v36 = vpop.f32.mrb[22].mxu1  ;;  %v1375_v21 = vpop.f32.mrb[26].mxu0 }
 0x3fb   :  { %v1335_v37 = vpop.f32.mrb[23].mxu1  ;;  %v1376_v38 = vpop.f32.mrb[27].mxu0 }
 0x418   :  { %v1471_v39 = vpop.f32.mrb[24].mxu1  ;;  %v1512_v40 = vpop.f32.mrb[28].mxu0 }
 0x419   :  { %v1473_v43 = vpop.f32.mrb[25].mxu1  ;;  %v1514_v44 = vpop.f32.mrb[29].mxu0 }
 0x41a   :  { %v1475_v47 = vpop.f32.mrb[26].mxu1  ;;  %v1516_v48 = vpop.f32.mrb[30].mxu0 }
 0x41b   :  { %v1476_v51 = vpop.f32.mrb[27].mxu1  ;;  %v1517_v52 = vpop.f32.mrb[31].mxu0 }
 0x438   :  { %v1610_v16 = vpop.f32.mrb[28].mxu1  ;;  %v1651_v17 = vpop.f32.mrb[32].mxu0 }
 0x439   :  { %v1612_v18 = vpop.f32.mrb[29].mxu1  ;;  %v1653_v19 = vpop.f32.mrb[33].mxu0 }
 0x43a   :  { %v1614_v20 = vpop.f32.mrb[30].mxu1  ;;  %v1655_v22 = vpop.f32.mrb[34].mxu0 }
 0x43b   :  { %v1615_v23 = vpop.f32.mrb[31].mxu1  ;;  %v1656_v24 = vpop.f32.mrb[35].mxu0 }
 0x43c   :  { %1744 = vsyncpa [#allocation5], 1 }
 0x43d   :  { %1745 = vsyncpa [#allocation7], 1 }

</bundles_post_ra>
